<compile_context>
chip_gen: v7x
topology: tpu7x:2x2x1
jax: 0.10.0
libtpu: 0.0.40
codegen_flags: <defaults>
</compile_context>

<pallas_src>
import jax
import jax.numpy as jnp
from jax.experimental import pallas as pl
from jax.experimental.pallas import tpu as pltpu


def mlp_kernel(x_ref, w1_ref, b1_ref, w2_ref, b2_ref, o_ref):
    """One batch tile: out = relu(x @ w1 + b1) @ w2 + b2."""
    # fc1: [TB, In](bf16) @ [In, H](bf16) -> f32 MXU accumulation.
    # The astype is a no-op if the caller already feeds bf16 activations.
    x_bf = x_ref[...].astype(jnp.bfloat16)
    h = jnp.dot(x_bf, w1_ref[...], preferred_element_type=jnp.float32)
    # Bias + ReLU epilogue in f32 on the VPU (hidden under the MXU work,
    # avoids bf16 VPU emulation on v5e).
    h = jnp.maximum(h + b1_ref[...], 0.0)
    # fc2: [TB, H](bf16) @ [H, Out](bf16) -> f32 MXU accumulation.
    out = jnp.dot(h.astype(jnp.bfloat16), w2_ref[...],
                  preferred_element_type=jnp.float32)
    out = out + b2_ref[...]
    o_ref[...] = out.astype(o_ref.dtype)
    # TODO(synk): if bundle dumps show vld/vst saturation from spilling the f32
    # `h` tile at large tb, sub-tile rows with lax.fori_loop(unroll=True) to
    # bound its live range; not needed at these shapes.


def prepare_params(w1, b1, w2, b2):
    """One-time parameter prep. Call once, NOT inside the per-step forward.

    - weights -> bf16 (native MXU dtype, half the HBM bytes); layout [in, out]
    - biases  -> f32, shaped (1, N) so they sit lane-dense in VMEM
    - output columns padded to a multiple of 128 so the kernel's output stores
      are unmasked lane-dense vst (the wrapper slices the padding back off)
    """
    In, H = w1.shape
    H2, Out = w2.shape
    assert H2 == H and b1.shape == (H,) and b2.shape == (Out,)

    out_pad = (-Out) % 128
    if out_pad:
        w2 = jnp.pad(w2, ((0, 0), (0, out_pad)))
        b2 = jnp.pad(b2, ((0, out_pad),))

    return dict(
        w1=w1.astype(jnp.bfloat16),
        b1=b1.reshape(1, H).astype(jnp.float32),
        w2=w2.astype(jnp.bfloat16),
        b2=b2.reshape(1, Out + out_pad).astype(jnp.float32),
        out_features=Out,
    )


def _const_spec(shape):
    """Constant-index block: fetched once, resident in VMEM across grid steps.

    Single-buffered (pl.Buffered(1)) since it is never re-fetched — halves its
    VMEM footprint vs default double buffering.  Falls back to the default if
    this JAX version's BlockSpec lacks the pipeline_mode kwarg.
    """
    try:
        return pl.BlockSpec(shape, lambda i: (0, 0),
                            pipeline_mode=pl.Buffered(1))
    except (TypeError, AttributeError):
        return pl.BlockSpec(shape, lambda i: (0, 0))


def simple_mlp_forward(x, params, *, tb=512):
    """x: [B, In] (f32 or bf16); params from prepare_params() -> [B, Out]."""
    B, In = x.shape
    w1, b1, w2, b2 = params["w1"], params["b1"], params["w2"], params["b2"]
    H = w1.shape[1]
    Outp = w2.shape[1]          # padded (lane-dense) output width
    Out = params["out_features"]
    assert w1.shape[0] == In

    # Batch tile: big enough to amortize per-step pipeline overhead.  If B is
    # smaller than the tile, the block equals the full batch dim (exempt from
    # the 8-divisibility rule).  Shrink only to guarantee >=4 grid steps
    # (>=2 per TensorCore on v7x) when the batch allows, never below 128 rows.
    tb = min(tb, B)
    while (B // tb) < 4 and tb >= 256 and tb % 16 == 0:
        tb //= 2
    n_blocks = pl.cdiv(B, tb)   # Pallas clips the partial last block; no pad.

    # Explicit scoped-VMEM budget: double-buffered x/out tiles + single-buffered
    # resident bf16 weights + f32 biases + the f32 hidden intermediate.
    itemsize = jnp.dtype(x.dtype).itemsize
    vmem_needed = (
        2 * tb * In * itemsize          # x tiles (double-buffered)
        + 2 * tb * Outp * itemsize      # out tiles (double-buffered)
        + (In * H + H * Outp) * 2       # resident bf16 weights
        + (H + Outp) * 4                # resident f32 biases
        + tb * H * 4                    # f32 hidden intermediate
    )
    vmem_limit = int(min(max(2 * vmem_needed, 32 * 1024 * 1024),
                         60 * 1024 * 1024))
    # TODO(synk): if resident bf16 weights approach ~48-56 MiB (large In*H /
    # H*Out), add a hidden-dim-tiled fallback (grid over H with an f32 VMEM
    # accumulator + pl.when init/finalize) for v7x's 64 MiB VMEM.

    out = pl.pallas_call(
        mlp_kernel,
        out_shape=jax.ShapeDtypeStruct((B, Outp), x.dtype),
        grid_spec=pl.GridSpec(
            grid=(n_blocks,),
            in_specs=[
                # activations: tiled over batch -> software-pipelined by Pallas
                pl.BlockSpec((tb, In), lambda i: (i, 0)),
                # weights / biases: constant index -> resident, single-buffered
                _const_spec((In, H)),
                _const_spec((1, H)),
                _const_spec((H, Outp)),
                _const_spec((1, Outp)),
            ],
            out_specs=pl.BlockSpec((tb, Outp), lambda i: (i, 0)),
        ),
        compiler_params=pltpu.CompilerParams(
            # batch tiles are independent -> megacore-shardable on v7x
            dimension_semantics=("parallel",),
            vmem_limit_bytes=vmem_limit,
        ),
    )(x, w1, b1, w2, b2)

    return out if Outp == Out else out[:, :Out]


if __name__ == "__main__":
    # Shapes implied by the module (input_size, hidden_size, output_size);
    # batch of 2048 with tb=512 -> 4 grid steps (even, >=2 per TC on v7x).
    batch = 2048
    input_size = 128
    hidden_size = 256
    output_size = 128

    key = jax.random.PRNGKey(0)
    kx, kw1, kb1, kw2, kb2 = jax.random.split(key, 5)

    x = jax.random.normal(kx, (batch, input_size), dtype=jnp.float32)
    w1 = jax.random.normal(kw1, (input_size, hidden_size), dtype=jnp.float32) * (
        1.0 / jnp.sqrt(input_size))
    b1 = jax.random.normal(kb1, (hidden_size,), dtype=jnp.float32) * 0.01
    w2 = jax.random.normal(kw2, (hidden_size, output_size), dtype=jnp.float32) * (
        1.0 / jnp.sqrt(hidden_size))
    b2 = jax.random.normal(kb2, (output_size,), dtype=jnp.float32) * 0.01

    # One-time parameter prep (bf16 weights etc.) -- NOT per forward call.
    params = prepare_params(w1, b1, w2, b2)

    out = simple_mlp_forward(x, params)
    out = jax.block_until_ready(out)
    assert out.shape == (batch, output_size)

    # Reference matching the kernel's numerics (bf16 inputs, f32 accumulate).
    h_ref = jnp.dot(x.astype(jnp.bfloat16), w1.astype(jnp.bfloat16),
                    preferred_element_type=jnp.float32) + b1
    h_ref = jnp.maximum(h_ref, 0.0)
    ref_bf16 = jnp.dot(h_ref.astype(jnp.bfloat16), w2.astype(jnp.bfloat16),
                       preferred_element_type=jnp.float32) + b2
    assert jnp.allclose(out, ref_bf16, atol=2e-3, rtol=2e-3)

    # Loose sanity check against the full-f32 math of the original module.
    ref_f32 = jnp.maximum(x @ w1 + b1, 0.0) @ w2 + b2
    rel_err = jnp.max(jnp.abs(out - ref_f32)) / (jnp.max(jnp.abs(ref_f32)) + 1e-6)
    assert rel_err < 5e-2

    # TODO(synk): the @flowery(verbose=True) print-decorator has no kernel
    # equivalent; shape logging is omitted.
    print("KERNEL_OK")
</pallas_src>

<mosaic_0001>
module attributes {stable_mosaic.version = 11 : i64} {
  func.func @mlp_kernel(%arg0: i32, %arg1: memref<512x128xf32, #tpu.memory_space<vmem>>, %arg2: memref<128x256xbf16, #tpu.memory_space<vmem>>, %arg3: memref<1x256xf32, #tpu.memory_space<vmem>>, %arg4: memref<256x128xbf16, #tpu.memory_space<vmem>>, %arg5: memref<1x128xf32, #tpu.memory_space<vmem>>, %arg6: memref<512x128xf32, #tpu.memory_space<vmem>>) attributes {dimension_semantics = [#tpu.dimension_semantics<parallel>], iteration_bounds = array<i64: 4>, scalar_prefetch = 0 : i64, scratch_operands = 0 : i64, tpu.core_type = #tpu.core_type<tc>, window_params = [{transform_indices = @transform_0, window_bounds = array<i64: 512, 128>}, {pipeline_mode = #tpu.pipeline_mode<synchronous>, transform_indices = @transform_1, window_bounds = array<i64: 128, 256>}, {pipeline_mode = #tpu.pipeline_mode<synchronous>, transform_indices = @transform_2, window_bounds = array<i64: 1, 256>}, {pipeline_mode = #tpu.pipeline_mode<synchronous>, transform_indices = @transform_3, window_bounds = array<i64: 256, 128>}, {pipeline_mode = #tpu.pipeline_mode<synchronous>, transform_indices = @transform_4, window_bounds = array<i64: 1, 128>}, {transform_indices = @transform_5, window_bounds = array<i64: 512, 128>}]} {
    %c0 = arith.constant 0 : index
    %c0_0 = arith.constant 0 : index
    %0 = vector.load %arg1[%c0, %c0_0] : memref<512x128xf32, #tpu.memory_space<vmem>>, vector<512x128xf32>
    %1 = arith.truncf %0 : vector<512x128xf32> to vector<512x128xbf16>
    %c0_1 = arith.constant 0 : index
    %c0_2 = arith.constant 0 : index
    %2 = vector.load %arg2[%c0_1, %c0_2] : memref<128x256xbf16, #tpu.memory_space<vmem>>, vector<128x256xbf16>
    %cst = arith.constant dense<0.000000e+00> : vector<512x256xf32>
    %3 = tpu.matmul %1, %2, %cst {dimension_numbers = #tpu.dot_dimension_numbers<[1], [0], [0], [1], [0, 0, 1, 1], [], []>} : vector<512x128xbf16>, vector<128x256xbf16>, vector<512x256xf32> -> vector<512x256xf32>
    %c0_3 = arith.constant 0 : index
    %c0_4 = arith.constant 0 : index
    %4 = vector.load %arg3[%c0_3, %c0_4] : memref<1x256xf32, #tpu.memory_space<vmem>>, vector<1x256xf32>
    %5 = vector.broadcast %4 : vector<1x256xf32> to vector<512x256xf32>
    %6 = arith.addf %3, %5 : vector<512x256xf32>
    %cst_5 = arith.constant 0.000000e+00 : f32
    %7 = vector.broadcast %cst_5 : f32 to vector<512x256xf32>
    %8 = arith.maximumf %6, %7 : vector<512x256xf32>
    %9 = arith.truncf %8 : vector<512x256xf32> to vector<512x256xbf16>
    %c0_6 = arith.constant 0 : index
    %c0_7 = arith.constant 0 : index
    %10 = vector.load %arg4[%c0_6, %c0_7] : memref<256x128xbf16, #tpu.memory_space<vmem>>, vector<256x128xbf16>
    %cst_8 = arith.constant dense<0.000000e+00> : vector<512x128xf32>
    %11 = tpu.matmul %9, %10, %cst_8 {dimension_numbers = #tpu.dot_dimension_numbers<[1], [0], [0], [1], [0, 0, 1, 1], [], []>} : vector<512x256xbf16>, vector<256x128xbf16>, vector<512x128xf32> -> vector<512x128xf32>
    %c0_9 = arith.constant 0 : index
    %c0_10 = arith.constant 0 : index
    %12 = vector.load %arg5[%c0_9, %c0_10] : memref<1x128xf32, #tpu.memory_space<vmem>>, vector<1x128xf32>
    %13 = vector.broadcast %12 : vector<1x128xf32> to vector<512x128xf32>
    %14 = arith.addf %11, %13 : vector<512x128xf32>
    %c0_11 = arith.constant 0 : index
    %c0_12 = arith.constant 0 : index
    %15 = vector.load %arg6[%c0_11, %c0_12] : memref<512x128xf32, #tpu.memory_space<vmem>>, vector<512x128xf32>
    tpu.vector_store %arg6[%c0_11, %c0_12], %14 {strides = array<i32>} : memref<512x128xf32, #tpu.memory_space<vmem>>, vector<512x128xf32>,
    return
  }
  func.func @transform_0(%arg0: i32) -> (i32, i32) {
    %c0_i32 = arith.constant 0 : i32
    %c0_i32_0 = arith.constant 0 : i32
    return %arg0, %c0_i32 : i32, i32
  }
  func.func @transform_1(%arg0: i32) -> (i32, i32) {
    %c0_i32 = arith.constant 0 : i32
    %c0_i32_0 = arith.constant 0 : i32
    %c0_i32_1 = arith.constant 0 : i32
    return %c0_i32, %c0_i32_0 : i32, i32
  }
  func.func @transform_2(%arg0: i32) -> (i32, i32) {
    %c0_i32 = arith.constant 0 : i32
    %c0_i32_0 = arith.constant 0 : i32
    %c0_i32_1 = arith.constant 0 : i32
    return %c0_i32, %c0_i32_0 : i32, i32
  }
  func.func @transform_3(%arg0: i32) -> (i32, i32) {
    %c0_i32 = arith.constant 0 : i32
    %c0_i32_0 = arith.constant 0 : i32
    %c0_i32_1 = arith.constant 0 : i32
    return %c0_i32, %c0_i32_0 : i32, i32
  }
  func.func @transform_4(%arg0: i32) -> (i32, i32) {
    %c0_i32 = arith.constant 0 : i32
    %c0_i32_0 = arith.constant 0 : i32
    %c0_i32_1 = arith.constant 0 : i32
    return %c0_i32, %c0_i32_0 : i32, i32
  }
  func.func @transform_5(%arg0: i32) -> (i32, i32) {
    %c0_i32 = arith.constant 0 : i32
    %c0_i32_0 = arith.constant 0 : i32
    return %arg0, %c0_i32 : i32, i32
  }
}

</mosaic_0001>

<bundles_post_ra>
// kernel: tpu_custom_call.1
= control target key start
LH: loop header
LB: loop body
LE: loop exit
PB: predicated region body
PF: predicated region fallthrough
CT: control target
= control target key end

     0   :  { %10 = vsyncpa [#allocation3], 0  ;;  %s2664_s0 = inlined_call_operand.hbm [shape: f32[2048,128], index: 0, kind: input, shape index: {}]   ;;  %s2665_s1 = inlined_call_operand.hbm [shape: bf16[128,256], index: 1, kind: input, shape index: {}]   ;;  %s2666_s2 = inlined_call_operand.vmem [shape: f32[1,256], index: 2, kind: input, shape index: {}]   ;;  %s2667_s3 = inlined_call_operand.hbm [shape: bf16[256,128], index: 3, kind: input, shape index: {}]   ;;  %s2668_s4 = inlined_call_operand.vmem [shape: f32[1,128], index: 4, kind: input, shape index: {}]   ;;  %s2669_s5 = inlined_call_operand.hbm [shape: f32[2048,128], index: 5, kind: output, shape index: {}]  }
   0x1   :  { %12 = vsyncpa [#allocation3 + $0x1], 0 }
   0x2   :  { %13 = vsyncpa [#allocation6], 0 }
   0x3   :  { %14 = vsyncpa [#allocation4], 0 }
   0x4   :  { %16 = vsyncpa [#allocation4 + $0x1], 0  ;;  %s2016_s18 = smov 0   ;;  %s2018_s19 = smov 0  }
   0x5   :  { %s2020_s20 = smov 0   ;;  %s2022_s21 = smov 0  }
   0x6 LB: > { %s2037_s22 = sadd.s32 4294967295, %s1973_s21   ;;  %s1618_s23 = sadd.s32 4294967294, %s1973_s21   ;;  %s1973_s21 = sphi %s2022_s21, %s2688_s21   ;;  %s1969_s20 = sphi %s2020_s20, %s2687_s20   ;;  %s1965_s19 = sphi %s2018_s19, %s2686_s19   ;;  %s1961_s18 = sphi %s2016_s18, %s2685_s18  }
   0x7   : > { %p42_p0 = scmp.ne.s32.totalorder %s1965_s19, %s1961_s18  ;;  %p2670_p1 = scmp.eq.s32.totalorder %s2037_s22, 0 }
   0x8   : > { %p156_p3 = scmp.eq.s32.totalorder %s1618_s23, 3  ;;  %p1619_p5 = scmp.ge.s32.totalorder %s1973_s21, 1 }
   0x9   : > { %p2046_p4 = por %p2670_p1, %p42_p0  ;;  %p163_p7 = scmp.lt.s32.totalorder %s1973_s21, 5 }
   0xa   : > { %p2051_p6 = por %p156_p3, %p42_p0  ;;  %s1975_s27 = smov [#allocation5]  }
   0xb   : > { %s2673_s24 = scalar_select %p2046_p4, 1, 0 }
   0xc   : > { %s2674_s25 = scalar_select %p2051_p6, 1, 0 }
   0xd   : > { %p2056_p8 = pnand %p1619_p5, %p163_p7  ;;  %s175_s28 = sshll.u32 %s1975_s27, 4  ;;  %s176_s28 = int_to_ptr.vmem [resolvable:$true] %s175_s28 }
   0xe   : > { %s1976_s30 = smov [#allocation7]   ;;  %s1817_s9 = scalar_lea.hbm %s2665_s1, 2048 }
   0xf   : > { %s2675_s26 = scalar_select %p2056_p8, 1, 0 }
  0x10   : > { %p1715_p9 = pneg %p2056_p8  ;;  %s191_s6 = sshll.u32 %s1976_s30, 4  ;;  %s2068_s6 = int_to_ptr.vmem [resolvable:$true] %s191_s6 }
  0x11   : > { %p1818_p11 = scmp.ne.s32.totalorder %s2665_s1, %s1817_s9  ;;  %p1824_p3 = scmp.lt.u32.totalorder %s1817_s9, %s2665_s1 }
  0x12   : > { %p2064_p10 = pnand %p1715_p9, %p2670_p1 }
  0x14   : > { %p1819_p12 = pneg %p2064_p10 }
  0x16   : > { %p1820_p13 = pnand %p1819_p12, %p1818_p11 }
  0x18   : > { %p1821_p0 = pneg %p1820_p13 }
  0x1a   : > { %p1826_p5 = pnand %p1824_p3, %p1821_p0 }
  0x1c   : > { %1829 = shalt.err (!%p1826_p5)
}
  0x1d   : > { %s1830_s14 = scalar_lea.vmem %s176_s28, 2048  ;;  %p1838_p2 = scmp.lt.s32.totalorder %s176_s28, %s176_s28 }
  0x1e   : > { %p1831_p7 = scmp.ne.s32.totalorder %s176_s28, %s1830_s14  ;;  %p1839_p6 = scmp.lt.s32.totalorder %s1830_s14, %s1830_s14 }
  0x20   : > { %p1833_p9 = pnand %p1831_p7, %p1819_p12  ;;  %p1840_p4 = por %p1839_p6, %p1838_p2 }
  0x22   : > { %p1834_p1 = pneg %p1833_p9 }
  0x24   : > { %p1841_p8 = pnand %p1840_p4, %p1834_p1 }
  0x26   : > { %1844 = shalt.err (!%p1841_p8)
}
  0x27   : > { %s1977_s15 = smov 128   ;;  %s1978_s16 = smov 8  }
  0x28   : > { %1718 = dma.hbm_to_vmem [thread:$0]  (!%p2064_p10), %s2665_s1, 2048, %s176_s28, [#allocation6], %s1977_s15, %s1977_s15, %s1978_s16  }
  0x29   : > { %s1845_s7 = scalar_lea.hbm %s2667_s3, 2048 }
  0x2a   : > { %p1846_p1 = scmp.ne.s32.totalorder %s2667_s3, %s1845_s7  ;;  %p1852_p6 = scmp.lt.u32.totalorder %s1845_s7, %s2667_s3 }
  0x2c   : > { %p1848_p2 = pnand %p1846_p1, %p1819_p12 }
  0x2e   : > { %p1849_p4 = pneg %p1848_p2 }
  0x30   : > { %p1854_p8 = pnand %p1852_p6, %p1849_p4 }
  0x32   : > { %1857 = shalt.err (!%p1854_p8)
}
  0x33   : > { %s1858_s28 = scalar_lea.vmem %s2068_s6, 2048  ;;  %p1866_p3 = scmp.lt.s32.totalorder %s2068_s6, %s2068_s6 }
  0x34   : > { %p1859_p11 = scmp.ne.s32.totalorder %s2068_s6, %s1858_s28  ;;  %p1867_p5 = scmp.lt.s32.totalorder %s1858_s28, %s1858_s28 }
  0x36   : > { %p1861_p13 = pnand %p1859_p11, %p1819_p12  ;;  %p1868_p7 = por %p1867_p5, %p1866_p3 }
  0x38   : > { %p1862_p0 = pneg %p1861_p13 }
  0x3a   : > { %p1869_p9 = pnand %p1868_p7, %p1862_p0 }
  0x3c   : > { %1872 = shalt.err (!%p1869_p9)
}
  0x3d   : > { %s1979_s12 = smov 64   ;;  %s1980_s13 = smov 4  }
  0x3e   : > { %1721 = dma.hbm_to_vmem [thread:$0]  (!%p2064_p10), %s2667_s3, 2048, %s2068_s6, [#allocation6], %s1979_s12, %s1979_s12, %s1980_s13  }
  0x3f   : > { %s2121_s23 = sadd.s32 1, %s1973_s21   ;;  %s29_s30 = sadd.s32 1, %s1969_s20 }
  0x40   : > { %s26_s27 = ssub.s32 %s1973_s21, %s2121_s23  ;;  %p36_p1 = scmp.ne.s32.totalorder %s1969_s20, %s1965_s19 }
  0x41   : > { %p27_p12 = scmp.eq.s32.totalorder %s26_s27, 0  ;;  %p37_p2 = scmp.eq.s32.totalorder %s1973_s21, 0 }
  0x42   : > { %p2677_p6 = scmp.eq.s32.totalorder %s2037_s22, 3  ;;  %p1732_p11 = scmp.lt.s32.totalorder %s1973_s21, 4 }
  0x43   : > { %s2130_s7 = scalar_select %p27_p12, %s1969_s20, %s29_s30  }
  0x44   : > { %p38_p4 = por %p37_p2, %p36_p1  ;;  %p2134_p8 = por %p2677_p6, %p36_p1 }
  0x45   : > { %s208_s29 = sand.u32 1, %s1969_s20   ;;  %s1669_s6 = sshll.u32 %s1973_s21, 13 }
  0x46   : > { %s1623_s9 = sshll.u32 %s208_s29, 9  ;;  %s2144_s28 = scalar_lea.hbm %s2664_s0, %s1669_s6 }
  0x47   : > { %s212_s12 = scalar_lea.vmem [#allocation2], %s1623_s9  ;;  %p2148_p10 = pnand %p1732_p11, %p38_p4 }
  0x48   : > { %s219_s13 = sshll.u32 %s212_s12, 4  ;;  %s2152_s17 = scalar_lea.sflag [#allocation3], %s208_s29  ;;  %s2146_s13 = int_to_ptr.vmem [resolvable:$true] %s219_s13 }
  0x49   : > { %s1873_s27 = scalar_lea.hbm %s2144_s28, 8192  ;;  %p1875_p0 = pneg %p2148_p10 }
  0x4a   : > { %p1874_p13 = scmp.ne.s32.totalorder %s2144_s28, %s1873_s27  ;;  %s1878_s6 = scalar_lea.hbm %s2664_s0, 32768 }
  0x4b   : > { %p1879_p7 = scmp.lt.u32.totalorder %s2144_s28, %s2664_s0  ;;  %p1880_p9 = scmp.lt.u32.totalorder %s1878_s6, %s1873_s27 }
  0x4c   : > { %p1876_p3 = pnand %p1875_p0, %p1874_p13  ;;  %p1882_p1 = scmp.lt.u32.totalorder %s1873_s27, %s2144_s28 }
  0x4d   : > { %p1881_p12 = por %p1880_p9, %p1879_p7 }
  0x4e   : > { %p1877_p5 = pneg %p1876_p3 }
  0x4f   : > { %p1883_p2 = por %p1882_p1, %p1881_p12 }
  0x51   : > { %p1884_p4 = pnand %p1883_p2, %p1877_p5 }
  0x53   : > { %1887 = shalt.err (!%p1884_p4)
}
  0x54   : > { %s1888_s29 = scalar_lea.vmem %s2146_s13, 8192  ;;  %s1981_s12 = smov [#allocation2]  }
  0x55   : > { %p1889_p6 = scmp.ne.s32.totalorder %s2146_s13, %s1888_s29  ;;  %s1893_s30 = sshll.u32 %s1981_s12, 4  ;;  %s1894_s30 = int_to_ptr.vmem [resolvable:$false] %s1893_s30 }
  0x56   : > { %s1895_s9 = scalar_lea.vmem %s1894_s30, 16384  ;;  %p1896_p3 = scmp.lt.s32.totalorder %s2146_s13, %s1894_s30 }
  0x57   : > { %p1891_p11 = pnand %p1889_p6, %p1875_p0  ;;  %p1897_p7 = scmp.lt.s32.totalorder %s1895_s9, %s1888_s29 }
  0x59   : > { %p1892_p13 = pneg %p1891_p11  ;;  %p1898_p9 = por %p1897_p7, %p1896_p3 }
  0x5b   : > { %p1899_p12 = pnand %p1898_p9, %p1892_p13 }
  0x5d   : > { %1902 = shalt.err (!%p1899_p12)
}
  0x5e   : > { %1725 = dma.hbm_to_vmem [thread:$0]  (!%p2148_p10), %s2144_s28, 8192, %s2146_s13, %s2152_s17, %s1977_s15, %s1977_s15, %s1978_s16  }
  0x5f   : > { %p2680_p0 = scmp.ne.s32.totalorder %s2675_s26, 0 }
  0x60   : > { %s2186_s27 = sand.u32 (!%p2680_p0), 1, %s1965_s19   ;;  %p2681_p5 = scmp.ne.s32.totalorder (!%p2680_p0), %s2673_s24, 0 }
  0x61   : > { %231 = sbr.rel (%p2680_p0) target bundleno = 843 (0x34b), region = 40  ;;  %s1627_s6 = sshll.u32 (!%p2680_p0), %s2186_s27, 9 }
  0x62   : > { %s234_s10 = scalar_lea.sflag (!%p2680_p0), [#allocation3], %s2186_s27  ;;  %s2192_s14 = scalar_lea.vmem (!%p2680_p0), [#allocation2], %s1627_s6 }
  0x68   : > { %1948 = dma.done.wait (%p2681_p5), %s234_s10, 8192  }
  0x69   : > { %1950 = vsyncadd (%p2681_p5), %s234_s10, 4294959104  ;;  %p2682_p10 = scmp.eq.s32.totalorder %s2037_s22, 0 }
  0x6b   : > { %1952 = dma.done.wait (%p2682_p10), [#allocation6], 4096   ;;  %p2683_p1 = pmov %p2682_p10 }
  0x6c   : > { %v1982_v0 = vmov 0   ;;  %v1777_v1 = vld [vmem:[#allocation5 + $0x4] ss:$8 sps:$4 sm:$0xff]   ;;  %v1779_v2 = vld [vmem:[#allocation5] ss:$8 sps:$4 sm:$0xff]   ;;  %v277_v20 = vld [vmem:[%s2192_s14 + $0x10] sm:$0xff] }
  0x6d   : > { %1954 = vsyncadd (%p2683_p1), [#allocation6], 4294963200  ;;  %511 = vmatprep.mubr.bf16.mxu0 %v1982_v0  ;;  %1671 = vmatprep.subr.bf16.mxu1 %v1982_v0  ;;  %v1780_v3 = vld [vmem:[#allocation5 + $0x14] ss:$8 sps:$4 sm:$0xff]   ;;  %v1782_v4 = vld [vmem:[#allocation5 + $0x10] ss:$8 sps:$4 sm:$0xff]  }
  0x6e   : > { %479 = vmatprep.subr.bf16.mxu0 %v1777_v1  ;;  %v1783_v5 = vld [vmem:[#allocation5 + $0x24] ss:$8 sps:$4 sm:$0xff]   ;;  %v1785_v6 = vld [vmem:[#allocation5 + $0x20] ss:$8 sps:$4 sm:$0xff]   ;;  %v1786_v7 = vld [vmem:[#allocation5 + $0x34] ss:$8 sps:$4 sm:$0xff]  }
  0x6f   : > { %480 = vmatpush1.bf16.msra.mxu0 %v1779_v2  ;;  %v1788_v8 = vld [vmem:[#allocation5 + $0x30] ss:$8 sps:$4 sm:$0xff]   ;;  %v1789_v9 = vld [vmem:[#allocation5 + $0x44] ss:$8 sps:$4 sm:$0xff]   ;;  %v1791_v10 = vld [vmem:[#allocation5 + $0x40] ss:$8 sps:$4 sm:$0xff]  }
  0x70   : > { %481 = vmatprep.subr.bf16.mxu0 %v1780_v3  ;;  %v1792_v11 = vld [vmem:[#allocation5 + $0x54] ss:$8 sps:$4 sm:$0xff]   ;;  %v1794_v12 = vld [vmem:[#allocation5 + $0x50] ss:$8 sps:$4 sm:$0xff]   ;;  %v1795_v13 = vld [vmem:[#allocation5 + $0x64] ss:$8 sps:$4 sm:$0xff]  }
  0x71   : > { %v1797_v14 = vld [vmem:[#allocation5 + $0x60] ss:$8 sps:$4 sm:$0xff]   ;;  %v1798_v15 = vld [vmem:[#allocation5 + $0x74] ss:$8 sps:$4 sm:$0xff]   ;;  %v1800_v16 = vld [vmem:[#allocation5 + $0x70] ss:$8 sps:$4 sm:$0xff]  }
  0x72   : > { %v275_v17 = vld [vmem:[%s2192_s14] sm:$0xff]  ;;  %v276_v18 = vld [vmem:[%s2192_s14 + $0x8] sm:$0xff]  ;;  %v278_v21 = vld [vmem:[%s2192_s14 + $0x18] sm:$0xff]  ;;  %s2477_s28 = scalar_lea.vmem [#allocation8], %s1627_s6  ;;  %s1670_s13 = sshll.u32 %s2037_s22, 13 }
  0x73   : > { %482 = vmatpush1.bf16.msra.mxu0 %v1782_v4  ;;  %v339_v19 = vpack.c.bf16 %v276_v18, %v275_v17  ;;  %v340_v22 = vpack.c.bf16 %v278_v21, %v277_v20  ;;  %v279_v23 = vld [vmem:[%s2192_s14 + $0x20] sm:$0xff]  ;;  %v280_v24 = vld [vmem:[%s2192_s14 + $0x28] sm:$0xff]  ;;  %v281_v26 = vld [vmem:[%s2192_s14 + $0x30] sm:$0xff]  ;;  %s1526_s17 = sshll.u32 %s2477_s28, 4  ;;  %s2616_s12 = scalar_lea.hbm %s2669_s5, %s1670_s13  ;;  %s2618_s17 = int_to_ptr.vmem [resolvable:$true] %s1526_s17 }
  0x74   : > { %483 = vmatprep.subr.bf16.mxu0 %v1783_v5  ;;  %v341_v25 = vpack.c.bf16 %v280_v24, %v279_v23  ;;  %v282_v27 = vld [vmem:[%s2192_s14 + $0x38] sm:$0xff]  ;;  %v283_v29 = vld [vmem:[%s2192_s14 + $0x40] sm:$0xff]  ;;  %v284_v30 = vld [vmem:[%s2192_s14 + $0x48] sm:$0xff]  ;;  %s1513_s22 = scalar_lea.sflag [#allocation4], %s2186_s27  ;;  %s1903_s30 = scalar_lea.vmem %s2618_s17, 8192 }
  0x75   : > { %v342_v28 = vpack.c.bf16 %v282_v27, %v281_v26  ;;  %v343_v31 = vpack.c.bf16 %v284_v30, %v283_v29  ;;  %v285_v32 = vld [vmem:[%s2192_s14 + $0x50] sm:$0xff]  ;;  %v286_v33 = vld [vmem:[%s2192_s14 + $0x58] sm:$0xff]  ;;  %v287_v35 = vld [vmem:[%s2192_s14 + $0x60] sm:$0xff]  ;;  %p1904_p2 = scmp.ne.s32.totalorder %s2618_s17, %s1903_s30  ;;  %s1983_s9 = smov [#allocation8]  }
  0x76   : > { %v344_v34 = vpack.c.bf16 %v286_v33, %v285_v32  ;;  %v288_v36 = vld [vmem:[%s2192_s14 + $0x68] sm:$0xff]  ;;  %v1801_v37 = vld [vmem:[#allocation7] sm:$0xff]   ;;  %v289_v40 = vld [vmem:[%s2192_s14 + $0x70] sm:$0xff]  ;;  %s1907_s6 = sshll.u32 %s1983_s9, 4  ;;  %s1908_s6 = int_to_ptr.vmem [resolvable:$false] %s1907_s6 }
  0x77   : > { %484 = vmatpush1.bf16.msra.mxu0 %v1785_v6  ;;  %1687 = vmatpush1.bf16.msra.mxu1 %v1801_v37  ;;  %v345_v38 = vpack.c.bf16 %v288_v36, %v287_v35  ;;  %v1802_v39 = vld [vmem:[#allocation7 + $0x8] sm:$0xff]   ;;  %v290_v41 = vld [vmem:[%s2192_s14 + $0x78] sm:$0xff]  ;;  %v1803_v42 = vld [vmem:[#allocation7 + $0x10] sm:$0xff]   ;;  %p1905_p4 = pnand %p1904_p2, %p2134_p8  ;;  %s1909_s10 = scalar_lea.vmem %s1908_s6, 16384 }
  0x78   : > { %485 = vmatprep.subr.bf16.mxu0 %v1786_v7  ;;  %1672 = vmatprep.subr.bf16.mxu1 %v1982_v0  ;;  %v346_v43 = vpack.c.bf16 %v290_v41, %v289_v40  ;;  %v1804_v44 = vld [vmem:[#allocation7 + $0x18] sm:$0xff]   ;;  %v291_v45 = vld [vmem:[%s2192_s14 + $0x80] sm:$0xff]  ;;  %v292_v46 = vld [vmem:[%s2192_s14 + $0x88] sm:$0xff]  ;;  %p1910_p11 = scmp.lt.s32.totalorder %s2618_s17, %s1908_s6  ;;  %p1911_p13 = scmp.lt.s32.totalorder %s1909_s10, %s1903_s30 }
  0x79   : > { %v1805_v47 = vld [vmem:[#allocation7 + $0x20] sm:$0xff]   ;;  %v347_v48 = vpack.c.bf16 %v292_v46, %v291_v45  ;;  %v1806_v49 = vld [vmem:[#allocation7 + $0x28] sm:$0xff]   ;;  %v293_v50 = vld [vmem:[%s2192_s14 + $0x90] sm:$0xff]  ;;  %p1906_p6 = pneg %p1905_p4 }
  0x7a   : > { %v294_v51 = vld [vmem:[%s2192_s14 + $0x98] sm:$0xff]  ;;  %v1807_v52 = vld [vmem:[#allocation7 + $0x30] sm:$0xff]   ;;  %v295_v55 = vld [vmem:[%s2192_s14 + $0xa0] sm:$0xff]  ;;  %p1912_p3 = por %p1911_p13, %p1910_p11 }
  0x7b   : > { %486 = vmatpush1.bf16.msra.mxu0 %v1788_v8  ;;  %1688 = vmatpush1.bf16.msra.mxu1 %v1802_v39  ;;  %v348_v53 = vpack.c.bf16 %v294_v51, %v293_v50  ;;  %v1808_v54 = vld [vmem:[#allocation7 + $0x38] sm:$0xff]   ;;  %v296_v56 = vld [vmem:[%s2192_s14 + $0xa8] sm:$0xff]  ;;  %v1809_v57 = vld [vmem:[#allocation7 + $0x40] sm:$0xff]  }
  0x7c   : > { %487 = vmatprep.subr.bf16.mxu0 %v1789_v9  ;;  %1673 = vmatprep.subr.bf16.mxu1 %v1982_v0  ;;  %v349_v58 = vpack.c.bf16 %v296_v56, %v295_v55  ;;  %v297_v59 = vld [vmem:[%s2192_s14 + $0xb0] sm:$0xff]  ;;  %v298_v60 = vld [vmem:[%s2192_s14 + $0xb8] sm:$0xff]  ;;  %v1810_v61 = vld [vmem:[#allocation7 + $0x48] sm:$0xff]   ;;  %p1913_p7 = pnand %p1912_p3, %p1906_p6 }
  0x7d   : > { %v350_v62 = vpack.c.bf16 %v298_v60, %v297_v59  ;;  %v1811_v63 = vld [vmem:[#allocation7 + $0x50] sm:$0xff]   ;;  %v299_v1 = vld [vmem:[%s2192_s14 + $0xc0] sm:$0xff]  ;;  %v300_v2 = vld [vmem:[%s2192_s14 + $0xc8] sm:$0xff] }
  0x7e   : > { %v1812_v3 = vld [vmem:[#allocation7 + $0x58] sm:$0xff]   ;;  %v351_v4 = vpack.c.bf16 %v300_v2, %v299_v1  ;;  %v1813_v5 = vld [vmem:[#allocation7 + $0x60] sm:$0xff]   ;;  %v301_v6 = vld [vmem:[%s2192_s14 + $0xd0] sm:$0xff] }
  0x7f   : > { %488 = vmatpush1.bf16.msra.mxu0 %v1791_v10  ;;  %1689 = vmatpush1.bf16.msra.mxu1 %v1803_v42  ;;  %v302_v7 = vld [vmem:[%s2192_s14 + $0xd8] sm:$0xff]  ;;  %v1814_v8 = vld [vmem:[#allocation7 + $0x68] sm:$0xff]   ;;  %v1815_v10 = vld [vmem:[#allocation7 + $0x70] sm:$0xff]  }
  0x80   : > { %489 = vmatprep.subr.bf16.mxu0 %v1792_v11  ;;  %1674 = vmatprep.subr.bf16.mxu1 %v1982_v0  ;;  %v352_v9 = vpack.c.bf16 %v302_v7, %v301_v6  ;;  %v303_v11 = vld [vmem:[%s2192_s14 + $0xe0] sm:$0xff]  ;;  %v309_v21 = vld [vmem:[%s2192_s14 + $0x110] sm:$0xff]  ;;  %v322_v40 = vld [vmem:[%s2192_s14 + $0x178] sm:$0xff] }
  0x81   : > { %v307_v18 = vld [vmem:[%s2192_s14 + $0x100] sm:$0xff]  ;;  %v313_v27 = vld [vmem:[%s2192_s14 + $0x130] sm:$0xff]  ;;  %v326_v46 = vld [vmem:[%s2192_s14 + $0x198] sm:$0xff] }
  0x82   : > { %v311_v24 = vld [vmem:[%s2192_s14 + $0x120] sm:$0xff]  ;;  %v317_v33 = vld [vmem:[%s2192_s14 + $0x150] sm:$0xff]  ;;  %v328_v51 = vld [vmem:[%s2192_s14 + $0x1a8] sm:$0xff] }
  0x83   : > { %490 = vmatpush1.bf16.msra.mxu0 %v1794_v12  ;;  %1690 = vmatpush1.bf16.msra.mxu1 %v1804_v44  ;;  %v304_v12 = vld [vmem:[%s2192_s14 + $0xe8] sm:$0xff]  ;;  %v315_v30 = vld [vmem:[%s2192_s14 + $0x140] sm:$0xff]  ;;  %v325_v45 = vld [vmem:[%s2192_s14 + $0x190] sm:$0xff] }
  0x84   : > { %491 = vmatprep.subr.bf16.mxu0 %v1795_v13  ;;  %1675 = vmatprep.subr.bf16.mxu1 %v1982_v0  ;;  %v1816_v13 = vld [vmem:[#allocation7 + $0x78] sm:$0xff]   ;;  %v319_v36 = vld [vmem:[%s2192_s14 + $0x160] sm:$0xff] }
  0x85   : > { %v327_v50 = vld [vmem:[%s2192_s14 + $0x1a0] sm:$0xff]  ;;  %v330_v59 = vld [vmem:[%s2192_s14 + $0x1b8] sm:$0xff] }
  0x87   : > { %492 = vmatpush1.bf16.msra.mxu0 %v1797_v14  ;;  %1691 = vmatpush1.bf16.msra.mxu1 %v1805_v47  ;;  %v353_v14 = vpack.c.bf16 %v304_v12, %v303_v11  ;;  %v332_v11 = vld [vmem:[%s2192_s14 + $0x1c8] sm:$0xff] }
  0x88   : > { %493 = vmatprep.subr.bf16.mxu0 %v1798_v15  ;;  %1676 = vmatprep.subr.bf16.mxu1 %v1982_v0  ;;  %v305_v15 = vld [vmem:[%s2192_s14 + $0xf0] sm:$0xff] }
  0x8b   : > { %494 = vmatpush1.bf16.msra.mxu0 %v1800_v16  ;;  %1692 = vmatpush1.bf16.msra.mxu1 %v1806_v49  ;;  %v306_v16 = vld [vmem:[%s2192_s14 + $0xf8] sm:$0xff] }
  0x8c   : > { %1159 = vmatprep.subr.bf16.mxu0 %v1982_v0  ;;  %1677 = vmatprep.subr.bf16.mxu1 %v1982_v0  ;;  %v354_v17 = vpack.c.bf16 %v306_v16, %v305_v15 }
  0x8e   : > { %512 = vmatmul.mubr.bf16.vlgmr.msra.gmra.mrb[0].mxu0 %v339_v19  ;;  %v308_v19 = vld [vmem:[%s2192_s14 + $0x108] sm:$0xff] }
  0x8f   : > { %521 = vmatprep.mubr.bf16.mxu0 %v1982_v0  ;;  %1160 = vmatpush1.bf16.msra.mxu0 %v1801_v37  ;;  %v355_v20 = vpack.c.bf16 %v308_v19, %v307_v18  ;;  %v320_v37 = vld [vmem:[%s2192_s14 + $0x168] sm:$0xff] }
  0x90   : > { %1161 = vmatprep.subr.bf16.mxu0 %v1982_v0  ;;  %1693 = vmatpush1.bf16.msra.mxu1 %v1807_v52 }
  0x91   : > { %1678 = vmatprep.subr.bf16.mxu1 %v1982_v0 }
  0x93   : > { %1162 = vmatpush1.bf16.msra.mxu0 %v1802_v39  ;;  %v321_v39 = vld [vmem:[%s2192_s14 + $0x170] sm:$0xff] }
  0x94   : > { %1163 = vmatprep.subr.bf16.mxu0 %v1982_v0  ;;  %1694 = vmatpush1.bf16.msra.mxu1 %v1808_v54  ;;  %v362_v41 = vpack.c.bf16 %v322_v40, %v321_v39 }
  0x95   : > { %1679 = vmatprep.subr.bf16.mxu1 %v1982_v0 }
  0x96   : > { %522 = vmatmul.mubr.bf16.gmra.mrb[4].mxu0 %v340_v22  ;;  %v310_v22 = vld [vmem:[%s2192_s14 + $0x118] sm:$0xff] }
  0x97   : > { %531 = vmatprep.mubr.bf16.mxu0 %v1982_v0  ;;  %1164 = vmatpush1.bf16.msra.mxu0 %v1803_v42  ;;  %v356_v23 = vpack.c.bf16 %v310_v22, %v309_v21  ;;  %v323_v42 = vld [vmem:[%s2192_s14 + $0x180] sm:$0xff] }
  0x98   : > { %1165 = vmatprep.subr.bf16.mxu0 %v1982_v0  ;;  %1695 = vmatpush1.bf16.msra.mxu1 %v1809_v57 }
  0x99   : > { %1680 = vmatprep.subr.bf16.mxu1 %v1982_v0 }
  0x9b   : > { %1166 = vmatpush1.bf16.msra.mxu0 %v1804_v44 }
  0x9c   : > { %1167 = vmatprep.subr.bf16.mxu0 %v1982_v0  ;;  %1696 = vmatpush1.bf16.msra.mxu1 %v1810_v61 }
  0x9d   : > { %1681 = vmatprep.subr.bf16.mxu1 %v1982_v0 }
  0x9e   : > { %532 = vmatmul.mubr.bf16.gmra.mrb[8].mxu0 %v341_v25  ;;  %v312_v25 = vld [vmem:[%s2192_s14 + $0x128] sm:$0xff] }
  0x9f   : > { %541 = vmatprep.mubr.bf16.mxu0 %v1982_v0  ;;  %1168 = vmatpush1.bf16.msra.mxu0 %v1805_v47  ;;  %v357_v26 = vpack.c.bf16 %v312_v25, %v311_v24  ;;  %v364_v47 = vpack.c.bf16 %v326_v46, %v325_v45  ;;  %v336_v45 = vld [vmem:[%s2192_s14 + $0x1e8] sm:$0xff] }
  0xa0   : > { %1169 = vmatprep.subr.bf16.mxu0 %v1982_v0  ;;  %1697 = vmatpush1.bf16.msra.mxu1 %v1811_v63 }
  0xa1   : > { %1682 = vmatprep.subr.bf16.mxu1 %v1982_v0 }
  0xa3   : > { %1170 = vmatpush1.bf16.msra.mxu0 %v1806_v49 }
  0xa4   : > { %1171 = vmatprep.subr.bf16.mxu0 %v1982_v0  ;;  %1698 = vmatpush1.bf16.msra.mxu1 %v1812_v3 }
  0xa5   : > { %1683 = vmatprep.subr.bf16.mxu1 %v1982_v0 }
  0xa6   : > { %542 = vmatmul.mubr.bf16.gmra.mrb[12].mxu0 %v342_v28  ;;  %v314_v28 = vld [vmem:[%s2192_s14 + $0x138] sm:$0xff] }
  0xa7   : > { %551 = vmatprep.mubr.bf16.mxu0 %v1982_v0  ;;  %1172 = vmatpush1.bf16.msra.mxu0 %v1807_v52  ;;  %v358_v29 = vpack.c.bf16 %v314_v28, %v313_v27  ;;  %v365_v52 = vpack.c.bf16 %v328_v51, %v327_v50  ;;  %v333_v27 = vld [vmem:[%s2192_s14 + $0x1d0] sm:$0xff]  ;;  %v334_v28 = vld [vmem:[%s2192_s14 + $0x1d8] sm:$0xff] }
  0xa8   : > { %1173 = vmatprep.subr.bf16.mxu0 %v1982_v0  ;;  %1699 = vmatpush1.bf16.msra.mxu1 %v1813_v5 }
  0xa9   : > { %1684 = vmatprep.subr.bf16.mxu1 %v1982_v0 }
  0xab   : > { %1174 = vmatpush1.bf16.msra.mxu0 %v1808_v54  ;;  %v387_v54 = vld [vmem:[%s2666_s2] sm:$0x3] }
  0xac   : > { %1175 = vmatprep.subr.bf16.mxu0 %v1982_v0  ;;  %1700 = vmatpush1.bf16.msra.mxu1 %v1814_v8 }
  0xad   : > { %1685 = vmatprep.subr.bf16.mxu1 %v1982_v0 }
  0xae   : > { %552 = vmatmul.mubr.bf16.gmra.mrb[16].mxu0 %v343_v31  ;;  %v316_v31 = vld [vmem:[%s2192_s14 + $0x148] sm:$0xff] }
  0xaf   : > { %561 = vmatprep.mubr.bf16.mxu0 %v1982_v0  ;;  %1176 = vmatpush1.bf16.msra.mxu0 %v1809_v57  ;;  %v359_v32 = vpack.c.bf16 %v316_v31, %v315_v30 }
  0xb0   : > { %1177 = vmatprep.subr.bf16.mxu0 %v1982_v0  ;;  %1701 = vmatpush1.bf16.msra.mxu1 %v1815_v10 }
  0xb1   : > { %1686 = vmatprep.subr.bf16.mxu1 %v1982_v0 }
  0xb3   : > { %1178 = vmatpush1.bf16.msra.mxu0 %v1810_v61 }
  0xb4   : > { %1179 = vmatprep.subr.bf16.mxu0 %v1982_v0  ;;  %1702 = vmatpush1.bf16.msra.mxu1 %v1816_v13 }
  0xb6   : > { %562 = vmatmul.mubr.bf16.gmra.mrb[20].mxu0 %v344_v34  ;;  %v318_v34 = vld [vmem:[%s2192_s14 + $0x158] sm:$0xff] }
  0xb7   : > { %571 = vmatprep.mubr.bf16.mxu0 %v1982_v0  ;;  %1180 = vmatpush1.bf16.msra.mxu0 %v1811_v63  ;;  %v360_v35 = vpack.c.bf16 %v318_v34, %v317_v33  ;;  %v368_v34 = vpack.c.bf16 %v334_v28, %v333_v27 }
  0xb8   : > { %1181 = vmatprep.subr.bf16.mxu0 %v1982_v0 }
  0xbb   : > { %1182 = vmatpush1.bf16.msra.mxu0 %v1812_v3 }
  0xbc   : > { %1183 = vmatprep.subr.bf16.mxu0 %v1982_v0 }
  0xbe   : > { %572 = vmatmul.mubr.bf16.gmra.mrb[24].mxu0 %v345_v38  ;;  %v361_v38 = vpack.c.bf16 %v320_v37, %v319_v36 }
  0xbf   : > { %581 = vmatprep.mubr.bf16.mxu0 %v1982_v0  ;;  %1184 = vmatpush1.bf16.msra.mxu0 %v1813_v5 }
  0xc0   : > { %1185 = vmatprep.subr.bf16.mxu0 %v1982_v0 }
  0xc3   : > { %1186 = vmatpush1.bf16.msra.mxu0 %v1814_v8 }
  0xc4   : > { %1187 = vmatprep.subr.bf16.mxu0 %v1982_v0 }
  0xc6   : > { %582 = vmatmul.mubr.bf16.gmra.mrb[28].mxu0 %v346_v43  ;;  %v324_v43 = vld [vmem:[%s2192_s14 + $0x188] sm:$0xff] }
  0xc7   : > { %591 = vmatprep.mubr.bf16.mxu0 %v1982_v0  ;;  %1188 = vmatpush1.bf16.msra.mxu0 %v1815_v10  ;;  %v363_v44 = vpack.c.bf16 %v324_v43, %v323_v42  ;;  %v331_v10 = vld [vmem:[%s2192_s14 + $0x1c0] sm:$0xff] }
  0xc8   : > { %1189 = vmatprep.subr.bf16.mxu0 %v1982_v0 }
  0xcb   : > { %1190 = vmatpush1.bf16.msra.mxu0 %v1816_v13 }
  0xce   : > { %592 = vmatmul.mubr.bf16.gmra.mrb[32].mxu0 %v347_v48  ;;  %v389_v48 = vlaneseq }
  0xcf   : > { %601 = vmatprep.mubr.bf16.mxu0 %v1982_v0 }
  0xd0   : > { %v390_v49 = vshrl.u32 %v389_v48, 7 }
  0xd2   : > { %v395_v55 = vsub.s32 1, %v390_v49 }
  0xd4   : > { %v2320_v57 = vrot.slane %v387_v54, %v395_v55 }
  0xd6   : > { %602 = vmatmul.mubr.bf16.gmra.mrb[36].mxu0 %v348_v53  ;;  %v391_v53 = vsub.s32 0, %v390_v49 }
  0xd7   : > { %611 = vmatprep.mubr.bf16.mxu0 %v1982_v0 }
  0xd8   : > { %v2318_v56 = vrot.slane %v387_v54, %v391_v53 }
  0xde   : > { %612 = vmatmul.mubr.bf16.gmra.mrb[40].mxu0 %v349_v58  ;;  %v329_v58 = vld [vmem:[%s2192_s14 + $0x1b0] sm:$0xff] }
  0xdf   : > { %621 = vmatprep.mubr.bf16.mxu0 %v1982_v0  ;;  %v366_v63 = vpack.c.bf16 %v330_v59, %v329_v58 }
  0xe6   : > { %622 = vmatmul.mubr.bf16.gmra.mrb[44].mxu0 %v350_v62 }
  0xe7   : > { %631 = vmatprep.mubr.bf16.mxu0 %v1982_v0 }
  0xee   : > { %632 = vmatmul.mubr.bf16.gmra.mrb[48].mxu0 %v351_v4 }
  0xef   : > { %641 = vmatprep.mubr.bf16.mxu0 %v1982_v0 }
  0xf6   : > { %642 = vmatmul.mubr.bf16.gmra.mrb[52].mxu0 %v352_v9 }
  0xf7   : > { %651 = vmatprep.mubr.bf16.mxu0 %v1982_v0 }
  0xfe   : > { %652 = vmatmul.mubr.bf16.gmra.mrb[56].mxu0 %v353_v14 }
  0xff   : > { %661 = vmatprep.mubr.bf16.mxu0 %v1982_v0 }
 0x106   : > { %662 = vmatmul.mubr.bf16.gmra.mrb[60].mxu0 %v354_v17  ;;  %v367_v17 = vpack.c.bf16 %v332_v11, %v331_v10 }
 0x107   : > { %671 = vmatprep.mubr.bf16.mxu0 %v1982_v0 }
 0x10e   : > { %672 = vmatmul.mubr.bf16.gmra.mrb[64].mxu0 %v355_v20 }
 0x10f   : > { %681 = vmatprep.mubr.bf16.mxu0 %v1982_v0 }
 0x116   : > { %682 = vmatmul.mubr.bf16.gmra.mrb[68].mxu0 %v356_v23 }
 0x117   : > { %691 = vmatprep.mubr.bf16.mxu0 %v1982_v0 }
 0x11e   : > { %692 = vmatmul.mubr.bf16.gmra.mrb[72].mxu0 %v357_v26 }
 0x11f   : > { %701 = vmatprep.mubr.bf16.mxu0 %v1982_v0 }
 0x126   : > { %702 = vmatmul.mubr.bf16.gmra.mrb[76].mxu0 %v358_v29 }
 0x127   : > { %711 = vmatprep.mubr.bf16.mxu0 %v1982_v0 }
 0x12e   : > { %712 = vmatmul.mubr.bf16.gmra.mrb[80].mxu0 %v359_v32 }
 0x12f   : > { %721 = vmatprep.mubr.bf16.mxu0 %v1982_v0 }
 0x136   : > { %722 = vmatmul.mubr.bf16.gmra.mrb[84].mxu0 %v360_v35 }
 0x137   : > { %731 = vmatprep.mubr.bf16.mxu0 %v1982_v0 }
 0x13e   : > { %732 = vmatmul.mubr.bf16.gmra.mrb[88].mxu0 %v361_v38 }
 0x13f   : > { %741 = vmatprep.mubr.bf16.mxu0 %v1982_v0 }
 0x146   : > { %742 = vmatmul.mubr.bf16.gmra.mrb[92].mxu0 %v362_v41 }
 0x147   : > { %751 = vmatprep.mubr.bf16.mxu0 %v1982_v0 }
 0x14e   : > { %752 = vmatmul.mubr.bf16.gmra.mrb[96].mxu0 %v363_v44  ;;  %v335_v44 = vld [vmem:[%s2192_s14 + $0x1e0] sm:$0xff] }
 0x14f   : > { %761 = vmatprep.mubr.bf16.mxu0 %v1982_v0  ;;  %v369_v51 = vpack.c.bf16 %v336_v45, %v335_v44 }
 0x156   : > { %762 = vmatmul.mubr.bf16.gmra.mrb[100].mxu0 %v364_v47 }
 0x157   : > { %771 = vmatprep.mubr.bf16.mxu0 %v1982_v0 }
 0x15e   : > { %772 = vmatmul.mubr.bf16.gmra.mrb[104].mxu0 %v365_v52 }
 0x15f   : > { %781 = vmatprep.mubr.bf16.mxu0 %v1982_v0 }
 0x161   : > { %v513_v60 = vpop.f32.mrb[0].mxu0 }
 0x162   : > { %v514_v61 = vadd.f32 %v513_v60, %v2318_v56  ;;  %v515_v62 = vpop.f32.mrb[1].mxu0 }
 0x163   : > { %v516_v1 = vadd.f32 %v515_v62, %v2320_v57  ;;  %v517_v2 = vpop.f32.mrb[2].mxu0 }
 0x164   : > { %v518_v3 = vadd.f32 %v517_v2, %v2318_v56  ;;  %v519_v4 = vpop.f32.mrb[3].mxu0  ;;  %v832_v6 = vmax.f32 %v514_v61, 0.0 }
 0x165   : > { %v520_v5 = vadd.f32 %v519_v4, %v2320_v57  ;;  %v833_v8 = vmax.f32 %v516_v1, 0.0  ;;  %v338_v1 = vld [vmem:[%s2192_s14 + $0x1f8] sm:$0xff] }
 0x166   : > { %v834_v7 = vmax.f32 %v518_v3, 0.0  ;;  %782 = vmatmul.mubr.bf16.gmra.mrb[108].mxu0 %v366_v63  ;;  %v337_v63 = vld [vmem:[%s2192_s14 + $0x1f0] sm:$0xff] }
 0x167   : > { %v835_v9 = vmax.f32 %v520_v5, 0.0  ;;  %791 = vmatprep.mubr.bf16.mxu0 %v1982_v0 }
 0x168   : > { %v2332_v12 = vpack.c.bf16 %v834_v7, %v832_v6  ;;  %v370_v7 = vpack.c.bf16 %v338_v1, %v337_v63 }
 0x169   : > { %v2334_v13 = vpack.c.bf16 %v835_v9, %v833_v8  ;;  %v523_v14 = vpop.f32.mrb[4].mxu0 }
 0x16a   : > { %v524_v15 = vadd.f32 %v523_v14, %v2318_v56  ;;  %v525_v16 = vpop.f32.mrb[5].mxu0 }
 0x16b   : > { %v526_v18 = vadd.f32 %v525_v16, %v2320_v57  ;;  %v527_v19 = vpop.f32.mrb[6].mxu0 }
 0x16c   : > { %v528_v20 = vadd.f32 %v527_v19, %v2318_v56  ;;  %v529_v21 = vpop.f32.mrb[7].mxu0  ;;  %v836_v23 = vmax.f32 %v524_v15, 0.0 }
 0x16d   : > { %v530_v22 = vadd.f32 %v529_v21, %v2320_v57  ;;  %v837_v25 = vmax.f32 %v526_v18, 0.0 }
 0x16e   : > { %v838_v24 = vmax.f32 %v528_v20, 0.0  ;;  %792 = vmatmul.mubr.bf16.gmra.mrb[112].mxu0 %v367_v17 }
 0x16f   : > { %v839_v26 = vmax.f32 %v530_v22, 0.0  ;;  %801 = vmatprep.mubr.bf16.mxu0 %v1982_v0 }
 0x170   : > { %v2343_v29 = vpack.c.bf16 %v838_v24, %v836_v23 }
 0x171   : > { %v2345_v30 = vpack.c.bf16 %v839_v26, %v837_v25  ;;  %v533_v31 = vpop.f32.mrb[8].mxu0 }
 0x172   : > { %v534_v32 = vadd.f32 %v533_v31, %v2318_v56  ;;  %v535_v33 = vpop.f32.mrb[9].mxu0 }
 0x173   : > { %v536_v35 = vadd.f32 %v535_v33, %v2320_v57  ;;  %v537_v36 = vpop.f32.mrb[10].mxu0 }
 0x174   : > { %v538_v37 = vadd.f32 %v537_v36, %v2318_v56  ;;  %v539_v38 = vpop.f32.mrb[11].mxu0  ;;  %v840_v40 = vmax.f32 %v534_v32, 0.0 }
 0x175   : > { %v540_v39 = vadd.f32 %v539_v38, %v2320_v57  ;;  %v841_v42 = vmax.f32 %v536_v35, 0.0 }
 0x176   : > { %v842_v41 = vmax.f32 %v538_v37, 0.0  ;;  %802 = vmatmul.mubr.bf16.gmra.mrb[116].mxu0 %v368_v34 }
 0x177   : > { %v843_v43 = vmax.f32 %v540_v39, 0.0  ;;  %811 = vmatprep.mubr.bf16.mxu0 %v1982_v0 }
 0x178   : > { %v964_v46 = vpack.c.bf16 %v842_v41, %v840_v40 }
 0x179   : > { %v543_v47 = vpop.f32.mrb[12].mxu0  ;;  %v965_v48 = vpack.c.bf16 %v843_v43, %v841_v42 }
 0x17a   : > { %v544_v49 = vadd.f32 %v543_v47, %v2318_v56  ;;  %v545_v50 = vpop.f32.mrb[13].mxu0 }
 0x17b   : > { %v546_v52 = vadd.f32 %v545_v50, %v2320_v57  ;;  %v547_v53 = vpop.f32.mrb[14].mxu0  ;;  %1207 = vmatprep.mubr.bf16.mxu1 %v965_v48 }
 0x17c   : > { %v548_v54 = vadd.f32 %v547_v53, %v2318_v56  ;;  %v549_v55 = vpop.f32.mrb[15].mxu0  ;;  %1208 = vmatmul.mubr.bf16.vlgmr.msra.gmra.mrb[0].mxu1 %v964_v46  ;;  %v844_v59 = vmax.f32 %v544_v49, 0.0 }
 0x17d   : > { %v550_v58 = vadd.f32 %v549_v55, %v2320_v57  ;;  %v845_v61 = vmax.f32 %v546_v52, 0.0 }
 0x17e   : > { %v846_v60 = vmax.f32 %v548_v54, 0.0  ;;  %812 = vmatmul.mubr.bf16.gmra.mrb[120].mxu0 %v369_v51 }
 0x17f   : > { %v847_v62 = vmax.f32 %v550_v58, 0.0  ;;  %821 = vmatprep.mubr.bf16.mxu0 %v1982_v0 }
 0x180   : > { %v966_v2 = vpack.c.bf16 %v846_v60, %v844_v59 }
 0x181   : > { %v967_v3 = vpack.c.bf16 %v847_v62, %v845_v61  ;;  %v553_v4 = vpop.f32.mrb[16].mxu0 }
 0x182   : > { %v554_v5 = vadd.f32 %v553_v4, %v2318_v56  ;;  %v555_v6 = vpop.f32.mrb[17].mxu0 }
 0x183   : > { %v556_v8 = vadd.f32 %v555_v6, %v2320_v57  ;;  %v557_v9 = vpop.f32.mrb[18].mxu0  ;;  %1215 = vmatprep.mubr.bf16.mxu1 %v967_v3 }
 0x184   : > { %v558_v10 = vadd.f32 %v557_v9, %v2318_v56  ;;  %v559_v11 = vpop.f32.mrb[19].mxu0  ;;  %1216 = vmatmul.mubr.bf16.gmra.mrb[4].mxu1 %v966_v2  ;;  %v848_v0 = vmax.f32 %v554_v5, 0.0 }
 0x185   : > { %v560_v14 = vadd.f32 %v559_v11, %v2320_v57  ;;  %v849_v16 = vmax.f32 %v556_v8, 0.0 }
 0x186   : > { %v850_v15 = vmax.f32 %v558_v10, 0.0  ;;  %822 = vmatmul.mubr.bf16.gmra.mrb[124].mxu0 %v370_v7 }
 0x187   : > { %v851_v17 = vmax.f32 %v560_v14, 0.0  ;;  %1191 = vmatprep.mubr.bf16.mxu0 %v2334_v13 }
 0x188   : > { %v968_v18 = vpack.c.bf16 %v850_v15, %v848_v0 }
 0x189   : > { %v969_v19 = vpack.c.bf16 %v851_v17, %v849_v16  ;;  %v563_v20 = vpop.f32.mrb[20].mxu0 }
 0x18a   : > { %v564_v21 = vadd.f32 %v563_v20, %v2318_v56  ;;  %v565_v22 = vpop.f32.mrb[21].mxu0 }
 0x18b   : > { %v566_v23 = vadd.f32 %v565_v22, %v2320_v57  ;;  %v567_v24 = vpop.f32.mrb[22].mxu0  ;;  %1223 = vmatprep.mubr.bf16.mxu1 %v969_v19 }
 0x18c   : > { %v568_v25 = vadd.f32 %v567_v24, %v2318_v56  ;;  %v569_v26 = vpop.f32.mrb[23].mxu0  ;;  %1224 = vmatmul.mubr.bf16.gmra.mrb[8].mxu1 %v968_v18  ;;  %v852_v28 = vmax.f32 %v564_v21, 0.0 }
 0x18d   : > { %v570_v27 = vadd.f32 %v569_v26, %v2320_v57  ;;  %v853_v13 = vmax.f32 %v566_v23, 0.0 }
 0x18e   : > { %v854_v31 = vmax.f32 %v568_v25, 0.0  ;;  %1192 = vmatmul.mubr.bf16.vlgmr.msra.gmra.mrb[128].mxu0 %v2332_v12 }
 0x18f   : > { %v855_v32 = vmax.f32 %v570_v27, 0.0  ;;  %1199 = vmatprep.mubr.bf16.mxu0 %v2345_v30 }
 0x190   : > { %v970_v33 = vpack.c.bf16 %v854_v31, %v852_v28 }
 0x191   : > { %v971_v34 = vpack.c.bf16 %v855_v32, %v853_v13  ;;  %v573_v35 = vpop.f32.mrb[24].mxu0 }
 0x192   : > { %v574_v36 = vadd.f32 %v573_v35, %v2318_v56  ;;  %v575_v37 = vpop.f32.mrb[25].mxu0 }
 0x193   : > { %v576_v38 = vadd.f32 %v575_v37, %v2320_v57  ;;  %v577_v39 = vpop.f32.mrb[26].mxu0  ;;  %1231 = vmatprep.mubr.bf16.mxu1 %v971_v34 }
 0x194   : > { %v578_v40 = vadd.f32 %v577_v39, %v2318_v56  ;;  %v579_v41 = vpop.f32.mrb[27].mxu0  ;;  %1232 = vmatmul.mubr.bf16.gmra.mrb[12].mxu1 %v970_v33  ;;  %v856_v42 = vmax.f32 %v574_v36, 0.0 }
 0x195   : > { %v580_v12 = vadd.f32 %v579_v41, %v2320_v57  ;;  %v857_v30 = vmax.f32 %v576_v38, 0.0 }
 0x196   : > { %v858_v43 = vmax.f32 %v578_v40, 0.0  ;;  %1200 = vmatmul.mubr.bf16.gmra.mrb[132].mxu0 %v2343_v29 }
 0x197   : > { %v859_v44 = vmax.f32 %v580_v12, 0.0 }
 0x198   : > { %v972_v45 = vpack.c.bf16 %v858_v43, %v856_v42 }
 0x199   : > { %v973_v46 = vpack.c.bf16 %v859_v44, %v857_v30  ;;  %v583_v47 = vpop.f32.mrb[28].mxu0 }
 0x19a   : > { %v584_v48 = vadd.f32 %v583_v47, %v2318_v56  ;;  %v585_v49 = vpop.f32.mrb[29].mxu0 }
 0x19b   : > { %v586_v50 = vadd.f32 %v585_v49, %v2320_v57  ;;  %v587_v51 = vpop.f32.mrb[30].mxu0  ;;  %1239 = vmatprep.mubr.bf16.mxu1 %v973_v46 }
 0x19c   : > { %v588_v52 = vadd.f32 %v587_v51, %v2318_v56  ;;  %v589_v53 = vpop.f32.mrb[31].mxu0  ;;  %1240 = vmatmul.mubr.bf16.gmra.mrb[16].mxu1 %v972_v45  ;;  %v860_v55 = vmax.f32 %v584_v48, 0.0 }
 0x19d   : > { %v590_v54 = vadd.f32 %v589_v53, %v2320_v57  ;;  %v861_v58 = vmax.f32 %v586_v50, 0.0 }
 0x19e   : > { %v862_v29 = vmax.f32 %v588_v52, 0.0 }
 0x19f   : > { %v863_v59 = vmax.f32 %v590_v54, 0.0 }
 0x1a0   : > { %v974_v60 = vpack.c.bf16 %v862_v29, %v860_v55 }
 0x1a1   : > { %v975_v61 = vpack.c.bf16 %v863_v59, %v861_v58  ;;  %v593_v62 = vpop.f32.mrb[32].mxu0 }
 0x1a2   : > { %v594_v63 = vadd.f32 %v593_v62, %v2318_v56  ;;  %v595_v1 = vpop.f32.mrb[33].mxu0 }
 0x1a3   : > { %v596_v2 = vadd.f32 %v595_v1, %v2320_v57  ;;  %v597_v3 = vpop.f32.mrb[34].mxu0  ;;  %1247 = vmatprep.mubr.bf16.mxu1 %v975_v61 }
 0x1a4   : > { %v598_v4 = vadd.f32 %v597_v3, %v2318_v56  ;;  %v599_v5 = vpop.f32.mrb[35].mxu0  ;;  %1248 = vmatmul.mubr.bf16.gmra.mrb[20].mxu1 %v974_v60  ;;  %v864_v7 = vmax.f32 %v594_v63, 0.0 }
 0x1a5   : > { %v600_v6 = vadd.f32 %v599_v5, %v2320_v57  ;;  %v865_v9 = vmax.f32 %v596_v2, 0.0 }
 0x1a6   : > { %v866_v8 = vmax.f32 %v598_v4, 0.0 }
 0x1a7   : > { %v867_v10 = vmax.f32 %v600_v6, 0.0 }
 0x1a8   : > { %v976_v11 = vpack.c.bf16 %v866_v8, %v864_v7 }
 0x1a9   : > { %v977_v14 = vpack.c.bf16 %v867_v10, %v865_v9  ;;  %v603_v0 = vpop.f32.mrb[36].mxu0 }
 0x1aa   : > { %v604_v15 = vadd.f32 %v603_v0, %v2318_v56  ;;  %v605_v16 = vpop.f32.mrb[37].mxu0 }
 0x1ab   : > { %v606_v17 = vadd.f32 %v605_v16, %v2320_v57  ;;  %v607_v18 = vpop.f32.mrb[38].mxu0  ;;  %1255 = vmatprep.mubr.bf16.mxu1 %v977_v14 }
 0x1ac   : > { %v608_v19 = vadd.f32 %v607_v18, %v2318_v56  ;;  %v609_v20 = vpop.f32.mrb[39].mxu0  ;;  %1256 = vmatmul.mubr.bf16.gmra.mrb[24].mxu1 %v976_v11  ;;  %v868_v22 = vmax.f32 %v604_v15, 0.0 }
 0x1ad   : > { %v610_v21 = vadd.f32 %v609_v20, %v2320_v57  ;;  %v869_v24 = vmax.f32 %v606_v17, 0.0 }
 0x1ae   : > { %v870_v23 = vmax.f32 %v608_v19, 0.0 }
 0x1af   : > { %v871_v25 = vmax.f32 %v610_v21, 0.0 }
 0x1b0   : > { %v978_v26 = vpack.c.bf16 %v870_v23, %v868_v22 }
 0x1b1   : > { %v979_v27 = vpack.c.bf16 %v871_v25, %v869_v24  ;;  %v613_v28 = vpop.f32.mrb[40].mxu0 }
 0x1b2   : > { %v614_v31 = vadd.f32 %v613_v28, %v2318_v56  ;;  %v615_v13 = vpop.f32.mrb[41].mxu0 }
 0x1b3   : > { %v616_v32 = vadd.f32 %v615_v13, %v2320_v57  ;;  %v617_v33 = vpop.f32.mrb[42].mxu0  ;;  %1263 = vmatprep.mubr.bf16.mxu1 %v979_v27 }
 0x1b4   : > { %v618_v34 = vadd.f32 %v617_v33, %v2318_v56  ;;  %v619_v35 = vpop.f32.mrb[43].mxu0  ;;  %1264 = vmatmul.mubr.bf16.gmra.mrb[28].mxu1 %v978_v26  ;;  %v872_v37 = vmax.f32 %v614_v31, 0.0 }
 0x1b5   : > { %v620_v36 = vadd.f32 %v619_v35, %v2320_v57  ;;  %v873_v39 = vmax.f32 %v616_v32, 0.0 }
 0x1b6   : > { %v874_v38 = vmax.f32 %v618_v34, 0.0 }
 0x1b7   : > { %v875_v40 = vmax.f32 %v620_v36, 0.0 }
 0x1b8   : > { %v980_v41 = vpack.c.bf16 %v874_v38, %v872_v37 }
 0x1b9   : > { %v981_v12 = vpack.c.bf16 %v875_v40, %v873_v39  ;;  %v623_v42 = vpop.f32.mrb[44].mxu0 }
 0x1ba   : > { %v624_v43 = vadd.f32 %v623_v42, %v2318_v56  ;;  %v625_v30 = vpop.f32.mrb[45].mxu0 }
 0x1bb   : > { %v626_v44 = vadd.f32 %v625_v30, %v2320_v57  ;;  %v627_v45 = vpop.f32.mrb[46].mxu0  ;;  %1271 = vmatprep.mubr.bf16.mxu1 %v981_v12 }
 0x1bc   : > { %v628_v46 = vadd.f32 %v627_v45, %v2318_v56  ;;  %v629_v47 = vpop.f32.mrb[47].mxu0  ;;  %1272 = vmatmul.mubr.bf16.gmra.mrb[32].mxu1 %v980_v41  ;;  %v876_v49 = vmax.f32 %v624_v43, 0.0 }
 0x1bd   : > { %v630_v48 = vadd.f32 %v629_v47, %v2320_v57  ;;  %v877_v51 = vmax.f32 %v626_v44, 0.0 }
 0x1be   : > { %v878_v50 = vmax.f32 %v628_v46, 0.0 }
 0x1bf   : > { %v879_v52 = vmax.f32 %v630_v48, 0.0 }
 0x1c0   : > { %v982_v53 = vpack.c.bf16 %v878_v50, %v876_v49 }
 0x1c1   : > { %v983_v54 = vpack.c.bf16 %v879_v52, %v877_v51  ;;  %v633_v55 = vpop.f32.mrb[48].mxu0 }
 0x1c2   : > { %v634_v29 = vadd.f32 %v633_v55, %v2318_v56  ;;  %v635_v58 = vpop.f32.mrb[49].mxu0 }
 0x1c3   : > { %v636_v59 = vadd.f32 %v635_v58, %v2320_v57  ;;  %v637_v60 = vpop.f32.mrb[50].mxu0  ;;  %1279 = vmatprep.mubr.bf16.mxu1 %v983_v54 }
 0x1c4   : > { %v638_v61 = vadd.f32 %v637_v60, %v2318_v56  ;;  %v639_v62 = vpop.f32.mrb[51].mxu0  ;;  %1280 = vmatmul.mubr.bf16.gmra.mrb[36].mxu1 %v982_v53  ;;  %v880_v1 = vmax.f32 %v634_v29, 0.0 }
 0x1c5   : > { %v640_v63 = vadd.f32 %v639_v62, %v2320_v57  ;;  %v881_v3 = vmax.f32 %v636_v59, 0.0 }
 0x1c6   : > { %v882_v2 = vmax.f32 %v638_v61, 0.0 }
 0x1c7   : > { %v883_v4 = vmax.f32 %v640_v63, 0.0 }
 0x1c8   : > { %v984_v5 = vpack.c.bf16 %v882_v2, %v880_v1 }
 0x1c9   : > { %v985_v6 = vpack.c.bf16 %v883_v4, %v881_v3  ;;  %v643_v7 = vpop.f32.mrb[52].mxu0 }
 0x1ca   : > { %v644_v8 = vadd.f32 %v643_v7, %v2318_v56  ;;  %v645_v9 = vpop.f32.mrb[53].mxu0 }
 0x1cb   : > { %v646_v10 = vadd.f32 %v645_v9, %v2320_v57  ;;  %v647_v11 = vpop.f32.mrb[54].mxu0  ;;  %1287 = vmatprep.mubr.bf16.mxu1 %v985_v6 }
 0x1cc   : > { %v648_v14 = vadd.f32 %v647_v11, %v2318_v56  ;;  %v649_v0 = vpop.f32.mrb[55].mxu0  ;;  %1288 = vmatmul.mubr.bf16.gmra.mrb[40].mxu1 %v984_v5  ;;  %v884_v16 = vmax.f32 %v644_v8, 0.0 }
 0x1cd   : > { %v650_v15 = vadd.f32 %v649_v0, %v2320_v57  ;;  %v885_v18 = vmax.f32 %v646_v10, 0.0 }
 0x1ce   : > { %v886_v17 = vmax.f32 %v648_v14, 0.0 }
 0x1cf   : > { %v887_v19 = vmax.f32 %v650_v15, 0.0 }
 0x1d0   : > { %v986_v20 = vpack.c.bf16 %v886_v17, %v884_v16 }
 0x1d1   : > { %v987_v21 = vpack.c.bf16 %v887_v19, %v885_v18  ;;  %v653_v22 = vpop.f32.mrb[56].mxu0 }
 0x1d2   : > { %v654_v23 = vadd.f32 %v653_v22, %v2318_v56  ;;  %v655_v24 = vpop.f32.mrb[57].mxu0 }
 0x1d3   : > { %v656_v25 = vadd.f32 %v655_v24, %v2320_v57  ;;  %v657_v26 = vpop.f32.mrb[58].mxu0  ;;  %1295 = vmatprep.mubr.bf16.mxu1 %v987_v21 }
 0x1d4   : > { %v658_v27 = vadd.f32 %v657_v26, %v2318_v56  ;;  %v659_v28 = vpop.f32.mrb[59].mxu0  ;;  %1296 = vmatmul.mubr.bf16.gmra.mrb[44].mxu1 %v986_v20  ;;  %v888_v13 = vmax.f32 %v654_v23, 0.0 }
 0x1d5   : > { %v660_v31 = vadd.f32 %v659_v28, %v2320_v57  ;;  %v889_v33 = vmax.f32 %v656_v25, 0.0 }
 0x1d6   : > { %v890_v32 = vmax.f32 %v658_v27, 0.0 }
 0x1d7   : > { %v891_v34 = vmax.f32 %v660_v31, 0.0 }
 0x1d8   : > { %v988_v35 = vpack.c.bf16 %v890_v32, %v888_v13 }
 0x1d9   : > { %v989_v36 = vpack.c.bf16 %v891_v34, %v889_v33  ;;  %v663_v37 = vpop.f32.mrb[60].mxu0 }
 0x1da   : > { %v664_v38 = vadd.f32 %v663_v37, %v2318_v56  ;;  %v665_v39 = vpop.f32.mrb[61].mxu0 }
 0x1db   : > { %v666_v40 = vadd.f32 %v665_v39, %v2320_v57  ;;  %v667_v41 = vpop.f32.mrb[62].mxu0  ;;  %1303 = vmatprep.mubr.bf16.mxu1 %v989_v36 }
 0x1dc   : > { %v668_v12 = vadd.f32 %v667_v41, %v2318_v56  ;;  %v669_v42 = vpop.f32.mrb[63].mxu0  ;;  %1304 = vmatmul.mubr.bf16.gmra.mrb[48].mxu1 %v988_v35  ;;  %v892_v30 = vmax.f32 %v664_v38, 0.0 }
 0x1dd   : > { %v670_v43 = vadd.f32 %v669_v42, %v2320_v57  ;;  %v893_v45 = vmax.f32 %v666_v40, 0.0 }
 0x1de   : > { %v894_v44 = vmax.f32 %v668_v12, 0.0 }
 0x1df   : > { %v895_v46 = vmax.f32 %v670_v43, 0.0 }
 0x1e0   : > { %v990_v47 = vpack.c.bf16 %v894_v44, %v892_v30 }
 0x1e1   : > { %v991_v48 = vpack.c.bf16 %v895_v46, %v893_v45  ;;  %v673_v49 = vpop.f32.mrb[64].mxu0 }
 0x1e2   : > { %v674_v50 = vadd.f32 %v673_v49, %v2318_v56  ;;  %v675_v51 = vpop.f32.mrb[65].mxu0 }
 0x1e3   : > { %v676_v52 = vadd.f32 %v675_v51, %v2320_v57  ;;  %v677_v53 = vpop.f32.mrb[66].mxu0  ;;  %1311 = vmatprep.mubr.bf16.mxu1 %v991_v48 }
 0x1e4   : > { %v678_v54 = vadd.f32 %v677_v53, %v2318_v56  ;;  %v679_v55 = vpop.f32.mrb[67].mxu0  ;;  %1312 = vmatmul.mubr.bf16.gmra.mrb[52].mxu1 %v990_v47  ;;  %v896_v58 = vmax.f32 %v674_v50, 0.0 }
 0x1e5   : > { %v680_v29 = vadd.f32 %v679_v55, %v2320_v57  ;;  %v897_v60 = vmax.f32 %v676_v52, 0.0 }
 0x1e6   : > { %v898_v59 = vmax.f32 %v678_v54, 0.0 }
 0x1e7   : > { %v899_v61 = vmax.f32 %v680_v29, 0.0 }
 0x1e8   : > { %v992_v62 = vpack.c.bf16 %v898_v59, %v896_v58 }
 0x1e9   : > { %v993_v63 = vpack.c.bf16 %v899_v61, %v897_v60  ;;  %v683_v1 = vpop.f32.mrb[68].mxu0 }
 0x1ea   : > { %v684_v2 = vadd.f32 %v683_v1, %v2318_v56  ;;  %v685_v3 = vpop.f32.mrb[69].mxu0 }
 0x1eb   : > { %v686_v4 = vadd.f32 %v685_v3, %v2320_v57  ;;  %v687_v5 = vpop.f32.mrb[70].mxu0  ;;  %1319 = vmatprep.mubr.bf16.mxu1 %v993_v63 }
 0x1ec   : > { %v688_v6 = vadd.f32 %v687_v5, %v2318_v56  ;;  %v689_v7 = vpop.f32.mrb[71].mxu0  ;;  %1320 = vmatmul.mubr.bf16.gmra.mrb[56].mxu1 %v992_v62  ;;  %v900_v9 = vmax.f32 %v684_v2, 0.0 }
 0x1ed   : > { %v690_v8 = vadd.f32 %v689_v7, %v2320_v57  ;;  %v901_v11 = vmax.f32 %v686_v4, 0.0 }
 0x1ee   : > { %v902_v10 = vmax.f32 %v688_v6, 0.0 }
 0x1ef   : > { %v903_v14 = vmax.f32 %v690_v8, 0.0 }
 0x1f0   : > { %v994_v0 = vpack.c.bf16 %v902_v10, %v900_v9 }
 0x1f1   : > { %v995_v15 = vpack.c.bf16 %v903_v14, %v901_v11  ;;  %v693_v16 = vpop.f32.mrb[72].mxu0 }
 0x1f2   : > { %v694_v17 = vadd.f32 %v693_v16, %v2318_v56  ;;  %v695_v18 = vpop.f32.mrb[73].mxu0 }
 0x1f3   : > { %v696_v19 = vadd.f32 %v695_v18, %v2320_v57  ;;  %v697_v20 = vpop.f32.mrb[74].mxu0  ;;  %1327 = vmatprep.mubr.bf16.mxu1 %v995_v15 }
 0x1f4   : > { %v698_v21 = vadd.f32 %v697_v20, %v2318_v56  ;;  %v699_v22 = vpop.f32.mrb[75].mxu0  ;;  %1328 = vmatmul.mubr.bf16.gmra.mrb[60].mxu1 %v994_v0  ;;  %v904_v24 = vmax.f32 %v694_v17, 0.0 }
 0x1f5   : > { %v700_v23 = vadd.f32 %v699_v22, %v2320_v57  ;;  %v905_v26 = vmax.f32 %v696_v19, 0.0 }
 0x1f6   : > { %v906_v25 = vmax.f32 %v698_v21, 0.0 }
 0x1f7   : > { %v907_v27 = vmax.f32 %v700_v23, 0.0 }
 0x1f8   : > { %v996_v28 = vpack.c.bf16 %v906_v25, %v904_v24 }
 0x1f9   : > { %v997_v31 = vpack.c.bf16 %v907_v27, %v905_v26  ;;  %v703_v13 = vpop.f32.mrb[76].mxu0 }
 0x1fa   : > { %v704_v32 = vadd.f32 %v703_v13, %v2318_v56  ;;  %v705_v33 = vpop.f32.mrb[77].mxu0 }
 0x1fb   : > { %v706_v34 = vadd.f32 %v705_v33, %v2320_v57  ;;  %v707_v35 = vpop.f32.mrb[78].mxu0  ;;  %1335 = vmatprep.mubr.bf16.mxu1 %v997_v31 }
 0x1fc   : > { %v708_v36 = vadd.f32 %v707_v35, %v2318_v56  ;;  %v709_v37 = vpop.f32.mrb[79].mxu0  ;;  %1336 = vmatmul.mubr.bf16.gmra.mrb[64].mxu1 %v996_v28  ;;  %v908_v39 = vmax.f32 %v704_v32, 0.0 }
 0x1fd   : > { %v710_v38 = vadd.f32 %v709_v37, %v2320_v57  ;;  %v909_v41 = vmax.f32 %v706_v34, 0.0 }
 0x1fe   : > { %v910_v40 = vmax.f32 %v708_v36, 0.0 }
 0x1ff   : > { %v911_v12 = vmax.f32 %v710_v38, 0.0 }
 0x200   : > { %v998_v42 = vpack.c.bf16 %v910_v40, %v908_v39 }
 0x201   : > { %v999_v43 = vpack.c.bf16 %v911_v12, %v909_v41  ;;  %v713_v30 = vpop.f32.mrb[80].mxu0 }
 0x202   : > { %v714_v44 = vadd.f32 %v713_v30, %v2318_v56  ;;  %v715_v45 = vpop.f32.mrb[81].mxu0 }
 0x203   : > { %v716_v46 = vadd.f32 %v715_v45, %v2320_v57  ;;  %v717_v47 = vpop.f32.mrb[82].mxu0  ;;  %1343 = vmatprep.mubr.bf16.mxu1 %v999_v43 }
 0x204   : > { %v718_v48 = vadd.f32 %v717_v47, %v2318_v56  ;;  %v719_v49 = vpop.f32.mrb[83].mxu0  ;;  %1344 = vmatmul.mubr.bf16.gmra.mrb[68].mxu1 %v998_v42  ;;  %v912_v51 = vmax.f32 %v714_v44, 0.0 }
 0x205   : > { %v720_v50 = vadd.f32 %v719_v49, %v2320_v57  ;;  %v913_v53 = vmax.f32 %v716_v46, 0.0 }
 0x206   : > { %v914_v52 = vmax.f32 %v718_v48, 0.0 }
 0x207   : > { %v915_v54 = vmax.f32 %v720_v50, 0.0 }
 0x208   : > { %v1000_v55 = vpack.c.bf16 %v914_v52, %v912_v51 }
 0x209   : > { %v1001_v29 = vpack.c.bf16 %v915_v54, %v913_v53  ;;  %v723_v58 = vpop.f32.mrb[84].mxu0 }
 0x20a   : > { %v724_v59 = vadd.f32 %v723_v58, %v2318_v56  ;;  %v725_v60 = vpop.f32.mrb[85].mxu0 }
 0x20b   : > { %v726_v61 = vadd.f32 %v725_v60, %v2320_v57  ;;  %v727_v62 = vpop.f32.mrb[86].mxu0  ;;  %1351 = vmatprep.mubr.bf16.mxu1 %v1001_v29 }
 0x20c   : > { %v728_v63 = vadd.f32 %v727_v62, %v2318_v56  ;;  %v729_v1 = vpop.f32.mrb[87].mxu0  ;;  %1352 = vmatmul.mubr.bf16.gmra.mrb[72].mxu1 %v1000_v55  ;;  %v916_v3 = vmax.f32 %v724_v59, 0.0 }
 0x20d   : > { %v730_v2 = vadd.f32 %v729_v1, %v2320_v57  ;;  %v917_v5 = vmax.f32 %v726_v61, 0.0 }
 0x20e   : > { %v918_v4 = vmax.f32 %v728_v63, 0.0 }
 0x20f   : > { %v919_v6 = vmax.f32 %v730_v2, 0.0 }
 0x210   : > { %v1002_v7 = vpack.c.bf16 %v918_v4, %v916_v3 }
 0x211   : > { %v1003_v8 = vpack.c.bf16 %v919_v6, %v917_v5  ;;  %v733_v9 = vpop.f32.mrb[88].mxu0 }
 0x212   : > { %v734_v10 = vadd.f32 %v733_v9, %v2318_v56  ;;  %v735_v11 = vpop.f32.mrb[89].mxu0 }
 0x213   : > { %v736_v14 = vadd.f32 %v735_v11, %v2320_v57  ;;  %v737_v0 = vpop.f32.mrb[90].mxu0  ;;  %1359 = vmatprep.mubr.bf16.mxu1 %v1003_v8 }
 0x214   : > { %v738_v15 = vadd.f32 %v737_v0, %v2318_v56  ;;  %v739_v16 = vpop.f32.mrb[91].mxu0  ;;  %1360 = vmatmul.mubr.bf16.gmra.mrb[76].mxu1 %v1002_v7  ;;  %v920_v18 = vmax.f32 %v734_v10, 0.0 }
 0x215   : > { %v740_v17 = vadd.f32 %v739_v16, %v2320_v57  ;;  %v921_v20 = vmax.f32 %v736_v14, 0.0 }
 0x216   : > { %v922_v19 = vmax.f32 %v738_v15, 0.0 }
 0x217   : > { %v923_v21 = vmax.f32 %v740_v17, 0.0 }
 0x218   : > { %v1004_v22 = vpack.c.bf16 %v922_v19, %v920_v18 }
 0x219   : > { %v1005_v23 = vpack.c.bf16 %v923_v21, %v921_v20  ;;  %v743_v24 = vpop.f32.mrb[92].mxu0 }
 0x21a   : > { %v744_v25 = vadd.f32 %v743_v24, %v2318_v56  ;;  %v745_v26 = vpop.f32.mrb[93].mxu0 }
 0x21b   : > { %v746_v27 = vadd.f32 %v745_v26, %v2320_v57  ;;  %v747_v28 = vpop.f32.mrb[94].mxu0  ;;  %1367 = vmatprep.mubr.bf16.mxu1 %v1005_v23 }
 0x21c   : > { %v748_v31 = vadd.f32 %v747_v28, %v2318_v56  ;;  %v749_v13 = vpop.f32.mrb[95].mxu0  ;;  %1368 = vmatmul.mubr.bf16.gmra.mrb[80].mxu1 %v1004_v22  ;;  %v924_v33 = vmax.f32 %v744_v25, 0.0 }
 0x21d   : > { %v750_v32 = vadd.f32 %v749_v13, %v2320_v57  ;;  %v925_v35 = vmax.f32 %v746_v27, 0.0 }
 0x21e   : > { %v926_v34 = vmax.f32 %v748_v31, 0.0 }
 0x21f   : > { %v927_v36 = vmax.f32 %v750_v32, 0.0 }
 0x220   : > { %v1006_v37 = vpack.c.bf16 %v926_v34, %v924_v33 }
 0x221   : > { %v1007_v38 = vpack.c.bf16 %v927_v36, %v925_v35  ;;  %v753_v39 = vpop.f32.mrb[96].mxu0 }
 0x222   : > { %v754_v40 = vadd.f32 %v753_v39, %v2318_v56  ;;  %v755_v41 = vpop.f32.mrb[97].mxu0 }
 0x223   : > { %v756_v12 = vadd.f32 %v755_v41, %v2320_v57  ;;  %v757_v42 = vpop.f32.mrb[98].mxu0  ;;  %1375 = vmatprep.mubr.bf16.mxu1 %v1007_v38 }
 0x224   : > { %v758_v43 = vadd.f32 %v757_v42, %v2318_v56  ;;  %v759_v30 = vpop.f32.mrb[99].mxu0  ;;  %1376 = vmatmul.mubr.bf16.gmra.mrb[84].mxu1 %v1006_v37  ;;  %v928_v45 = vmax.f32 %v754_v40, 0.0 }
 0x225   : > { %v760_v44 = vadd.f32 %v759_v30, %v2320_v57  ;;  %v929_v47 = vmax.f32 %v756_v12, 0.0 }
 0x226   : > { %v930_v46 = vmax.f32 %v758_v43, 0.0 }
 0x227   : > { %v931_v48 = vmax.f32 %v760_v44, 0.0 }
 0x228   : > { %v1008_v49 = vpack.c.bf16 %v930_v46, %v928_v45 }
 0x229   : > { %v1009_v50 = vpack.c.bf16 %v931_v48, %v929_v47  ;;  %v763_v51 = vpop.f32.mrb[100].mxu0 }
 0x22a   : > { %v764_v52 = vadd.f32 %v763_v51, %v2318_v56  ;;  %v765_v53 = vpop.f32.mrb[101].mxu0 }
 0x22b   : > { %v766_v54 = vadd.f32 %v765_v53, %v2320_v57  ;;  %v767_v55 = vpop.f32.mrb[102].mxu0  ;;  %1383 = vmatprep.mubr.bf16.mxu1 %v1009_v50  ;;  %v2472_v53 = vld [vmem:[%s2668_s4] ss:$0 sm:$0xff] }
 0x22c   : > { %v768_v29 = vadd.f32 %v767_v55, %v2318_v56  ;;  %v769_v58 = vpop.f32.mrb[103].mxu0  ;;  %1384 = vmatmul.mubr.bf16.gmra.mrb[88].mxu1 %v1008_v49  ;;  %v932_v60 = vmax.f32 %v764_v52, 0.0 }
 0x22d   : > { %v770_v59 = vadd.f32 %v769_v58, %v2320_v57  ;;  %v933_v62 = vmax.f32 %v766_v54, 0.0 }
 0x22e   : > { %v934_v61 = vmax.f32 %v768_v29, 0.0 }
 0x22f   : > { %v935_v63 = vmax.f32 %v770_v59, 0.0 }
 0x230   : > { %v1010_v1 = vpack.c.bf16 %v934_v61, %v932_v60 }
 0x231   : > { %v1011_v2 = vpack.c.bf16 %v935_v63, %v933_v62  ;;  %v773_v3 = vpop.f32.mrb[104].mxu0 }
 0x232   : > { %v774_v4 = vadd.f32 %v773_v3, %v2318_v56  ;;  %v775_v5 = vpop.f32.mrb[105].mxu0 }
 0x233   : > { %v776_v6 = vadd.f32 %v775_v5, %v2320_v57  ;;  %v777_v7 = vpop.f32.mrb[106].mxu0  ;;  %1391 = vmatprep.mubr.bf16.mxu1 %v1011_v2 }
 0x234   : > { %v778_v8 = vadd.f32 %v777_v7, %v2318_v56  ;;  %v779_v9 = vpop.f32.mrb[107].mxu0  ;;  %1392 = vmatmul.mubr.bf16.gmra.mrb[92].mxu1 %v1010_v1  ;;  %v936_v11 = vmax.f32 %v774_v4, 0.0 }
 0x235   : > { %v780_v10 = vadd.f32 %v779_v9, %v2320_v57  ;;  %v937_v0 = vmax.f32 %v776_v6, 0.0 }
 0x236   : > { %v938_v14 = vmax.f32 %v778_v8, 0.0 }
 0x237   : > { %v939_v15 = vmax.f32 %v780_v10, 0.0 }
 0x238   : > { %v1012_v16 = vpack.c.bf16 %v938_v14, %v936_v11 }
 0x239   : > { %v1013_v17 = vpack.c.bf16 %v939_v15, %v937_v0  ;;  %v783_v18 = vpop.f32.mrb[108].mxu0 }
 0x23a   : > { %v784_v19 = vadd.f32 %v783_v18, %v2318_v56  ;;  %v785_v20 = vpop.f32.mrb[109].mxu0 }
 0x23b   : > { %v786_v21 = vadd.f32 %v785_v20, %v2320_v57  ;;  %v787_v22 = vpop.f32.mrb[110].mxu0  ;;  %1399 = vmatprep.mubr.bf16.mxu1 %v1013_v17 }
 0x23c   : > { %v788_v23 = vadd.f32 %v787_v22, %v2318_v56  ;;  %v789_v24 = vpop.f32.mrb[111].mxu0  ;;  %1400 = vmatmul.mubr.bf16.gmra.mrb[96].mxu1 %v1012_v16  ;;  %v940_v26 = vmax.f32 %v784_v19, 0.0 }
 0x23d   : > { %v790_v25 = vadd.f32 %v789_v24, %v2320_v57  ;;  %v941_v28 = vmax.f32 %v786_v21, 0.0 }
 0x23e   : > { %v942_v27 = vmax.f32 %v788_v23, 0.0 }
 0x23f   : > { %v943_v31 = vmax.f32 %v790_v25, 0.0 }
 0x240   : > { %v1014_v13 = vpack.c.bf16 %v942_v27, %v940_v26 }
 0x241   : > { %v1015_v32 = vpack.c.bf16 %v943_v31, %v941_v28  ;;  %v793_v33 = vpop.f32.mrb[112].mxu0 }
 0x242   : > { %v794_v34 = vadd.f32 %v793_v33, %v2318_v56  ;;  %v795_v35 = vpop.f32.mrb[113].mxu0 }
 0x243   : > { %v796_v36 = vadd.f32 %v795_v35, %v2320_v57  ;;  %v797_v37 = vpop.f32.mrb[114].mxu0  ;;  %1407 = vmatprep.mubr.bf16.mxu1 %v1015_v32 }
 0x244   : > { %v798_v38 = vadd.f32 %v797_v37, %v2318_v56  ;;  %v799_v39 = vpop.f32.mrb[115].mxu0  ;;  %1408 = vmatmul.mubr.bf16.gmra.mrb[100].mxu1 %v1014_v13  ;;  %v944_v41 = vmax.f32 %v794_v34, 0.0 }
 0x245   : > { %v800_v40 = vadd.f32 %v799_v39, %v2320_v57  ;;  %v945_v42 = vmax.f32 %v796_v36, 0.0 }
 0x246   : > { %v946_v12 = vmax.f32 %v798_v38, 0.0 }
 0x247   : > { %v947_v43 = vmax.f32 %v800_v40, 0.0 }
 0x248   : > { %v1016_v30 = vpack.c.bf16 %v946_v12, %v944_v41 }
 0x249   : > { %v1017_v44 = vpack.c.bf16 %v947_v43, %v945_v42  ;;  %v803_v45 = vpop.f32.mrb[116].mxu0 }
 0x24a   : > { %v804_v46 = vadd.f32 %v803_v45, %v2318_v56  ;;  %v805_v47 = vpop.f32.mrb[117].mxu0 }
 0x24b   : > { %v806_v48 = vadd.f32 %v805_v47, %v2320_v57  ;;  %v807_v49 = vpop.f32.mrb[118].mxu0  ;;  %1415 = vmatprep.mubr.bf16.mxu1 %v1017_v44 }
 0x24c   : > { %v808_v50 = vadd.f32 %v807_v49, %v2318_v56  ;;  %v809_v51 = vpop.f32.mrb[119].mxu0  ;;  %1416 = vmatmul.mubr.bf16.gmra.mrb[104].mxu1 %v1016_v30  ;;  %v948_v54 = vmax.f32 %v804_v46, 0.0 }
 0x24d   : > { %v810_v52 = vadd.f32 %v809_v51, %v2320_v57  ;;  %v949_v29 = vmax.f32 %v806_v48, 0.0 }
 0x24e   : > { %v950_v55 = vmax.f32 %v808_v50, 0.0 }
 0x24f   : > { %v951_v58 = vmax.f32 %v810_v52, 0.0  ;;  %v1209_v59 = vpop.f32.mrb[0].mxu1 }
 0x250   : > { %v1018_v60 = vpack.c.bf16 %v950_v55, %v948_v54  ;;  %v1210_v61 = vadd.f32 %v2472_v53, %v1209_v59  ;;  %v1211_v62 = vpop.f32.mrb[1].mxu1 }
 0x251   : > { %v1019_v63 = vpack.c.bf16 %v951_v58, %v949_v29  ;;  %v813_v1 = vpop.f32.mrb[120].mxu0  ;;  %v1212_v2 = vpop.f32.mrb[2].mxu1 }
 0x252   : > { %1452 = vst [vmem:[%s2477_s28 + $0x20] sm:$0xff] %v1210_v61  ;;  %v814_v3 = vadd.f32 %v813_v1, %v2318_v56  ;;  %v1213_v4 = vadd.f32 %v2472_v53, %v1212_v2  ;;  %v815_v5 = vpop.f32.mrb[121].mxu0  ;;  %v1214_v6 = vpop.f32.mrb[3].mxu1 }
 0x253   : > { %v816_v7 = vadd.f32 %v815_v5, %v2320_v57  ;;  %v817_v8 = vpop.f32.mrb[122].mxu0  ;;  %1423 = vmatprep.mubr.bf16.mxu1 %v1019_v63 }
 0x254   : > { %1453 = vst [vmem:[%s2477_s28 + $0x28] sm:$0xff] %v1213_v4  ;;  %v818_v9 = vadd.f32 %v817_v8, %v2318_v56  ;;  %v819_v10 = vpop.f32.mrb[123].mxu0  ;;  %1424 = vmatmul.mubr.bf16.gmra.mrb[108].mxu1 %v1018_v60  ;;  %v952_v14 = vmax.f32 %v814_v3, 0.0 }
 0x255   : > { %v820_v11 = vadd.f32 %v819_v10, %v2320_v57  ;;  %v953_v15 = vmax.f32 %v816_v7, 0.0 }
 0x256   : > { %v954_v0 = vmax.f32 %v818_v9, 0.0 }
 0x257   : > { %v955_v16 = vmax.f32 %v820_v11, 0.0  ;;  %v1217_v17 = vpop.f32.mrb[4].mxu1 }
 0x258   : > { %v1020_v18 = vpack.c.bf16 %v954_v0, %v952_v14  ;;  %v1218_v19 = vadd.f32 %v2472_v53, %v1217_v17  ;;  %v1219_v20 = vpop.f32.mrb[5].mxu1 }
 0x259   : > { %v1021_v21 = vpack.c.bf16 %v955_v16, %v953_v15  ;;  %v823_v22 = vpop.f32.mrb[124].mxu0  ;;  %v1220_v23 = vpop.f32.mrb[6].mxu1 }
 0x25a   : > { %1454 = vst [vmem:[%s2477_s28 + $0x30] sm:$0xff] %v1218_v19  ;;  %v824_v24 = vadd.f32 %v823_v22, %v2318_v56  ;;  %v1221_v25 = vadd.f32 %v2472_v53, %v1220_v23  ;;  %v825_v26 = vpop.f32.mrb[125].mxu0  ;;  %v1222_v27 = vpop.f32.mrb[7].mxu1 }
 0x25b   : > { %v826_v28 = vadd.f32 %v825_v26, %v2320_v57  ;;  %v827_v31 = vpop.f32.mrb[126].mxu0  ;;  %1431 = vmatprep.mubr.bf16.mxu1 %v1021_v21 }
 0x25c   : > { %1455 = vst [vmem:[%s2477_s28 + $0x38] sm:$0xff] %v1221_v25  ;;  %v828_v13 = vadd.f32 %v827_v31, %v2318_v56  ;;  %v829_v32 = vpop.f32.mrb[127].mxu0  ;;  %1432 = vmatmul.mubr.bf16.gmra.mrb[112].mxu1 %v1020_v18  ;;  %v956_v34 = vmax.f32 %v824_v24, 0.0 }
 0x25d   : > { %v830_v33 = vadd.f32 %v829_v32, %v2320_v57  ;;  %v957_v36 = vmax.f32 %v826_v28, 0.0 }
 0x25e   : > { %v958_v35 = vmax.f32 %v828_v13, 0.0 }
 0x25f   : > { %v959_v37 = vmax.f32 %v830_v33, 0.0  ;;  %v1225_v38 = vpop.f32.mrb[8].mxu1 }
 0x260   : > { %v1022_v39 = vpack.c.bf16 %v958_v35, %v956_v34  ;;  %v1226_v40 = vadd.f32 %v2472_v53, %v1225_v38  ;;  %v1227_v41 = vpop.f32.mrb[9].mxu1 }
 0x261   : > { %v1023_v12 = vpack.c.bf16 %v959_v37, %v957_v36  ;;  %v1193_v42 = vpop.f32.mrb[128].mxu0  ;;  %v1228_v43 = vpop.f32.mrb[10].mxu1 }
 0x262   : > { %1456 = vst [vmem:[%s2477_s28 + $0x40] sm:$0xff] %v1226_v40  ;;  %v1194_v56 = vadd.f32 %v2472_v53, %v1193_v42  ;;  %v1229_v57 = vadd.f32 %v2472_v53, %v1228_v43  ;;  %v1195_v30 = vpop.f32.mrb[129].mxu0  ;;  %v1230_v44 = vpop.f32.mrb[11].mxu1 }
 0x263   : > { %v1196_v45 = vpop.f32.mrb[130].mxu0  ;;  %1439 = vmatprep.mubr.bf16.mxu1 %v1023_v12 }
 0x264   : > { %1448 = vst [vmem:[%s2477_s28] sm:$0xff] %v1194_v56  ;;  %1457 = vst [vmem:[%s2477_s28 + $0x48] sm:$0xff] %v1229_v57  ;;  %v1197_v46 = vadd.f32 %v2472_v53, %v1196_v45  ;;  %v1198_v47 = vpop.f32.mrb[131].mxu0  ;;  %1440 = vmatmul.mubr.bf16.gmra.mrb[116].mxu1 %v1022_v39 }
 0x266   : > { %1449 = vst [vmem:[%s2477_s28 + $0x8] sm:$0xff] %v1197_v46 }
 0x267   : > { %v1233_v48 = vpop.f32.mrb[12].mxu1 }
 0x268   : > { %v1234_v49 = vadd.f32 %v2472_v53, %v1233_v48  ;;  %v1235_v50 = vpop.f32.mrb[13].mxu1 }
 0x269   : > { %v1201_v51 = vpop.f32.mrb[132].mxu0  ;;  %v1236_v52 = vpop.f32.mrb[14].mxu1 }
 0x26a   : > { %1458 = vst [vmem:[%s2477_s28 + $0x50] sm:$0xff] %v1234_v49  ;;  %v1202_v54 = vadd.f32 %v2472_v53, %v1201_v51  ;;  %v1237_v55 = vadd.f32 %v2472_v53, %v1236_v52  ;;  %v1203_v29 = vpop.f32.mrb[133].mxu0  ;;  %v1238_v58 = vpop.f32.mrb[15].mxu1 }
 0x26b   : > { %v1204_v59 = vpop.f32.mrb[134].mxu0 }
 0x26c   : > { %1450 = vst [vmem:[%s2477_s28 + $0x10] sm:$0xff] %v1202_v54  ;;  %1459 = vst [vmem:[%s2477_s28 + $0x58] sm:$0xff] %v1237_v55  ;;  %v1205_v60 = vadd.f32 %v2472_v53, %v1204_v59  ;;  %v1206_v61 = vpop.f32.mrb[135].mxu0 }
 0x26e   : > { %1451 = vst [vmem:[%s2477_s28 + $0x18] sm:$0xff] %v1205_v60 }
 0x26f   : > { %v1241_v62 = vpop.f32.mrb[16].mxu1 }
 0x270   : > { %v1242_v63 = vadd.f32 %v2472_v53, %v1241_v62  ;;  %v1243_v1 = vpop.f32.mrb[17].mxu1 }
 0x271   : > { %v1244_v2 = vpop.f32.mrb[18].mxu1 }
 0x272   : > { %1460 = vst [vmem:[%s2477_s28 + $0x60] sm:$0xff] %v1242_v63  ;;  %v1245_v3 = vadd.f32 %v2472_v53, %v1244_v2  ;;  %v1246_v4 = vpop.f32.mrb[19].mxu1 }
 0x274   : > { %1461 = vst [vmem:[%s2477_s28 + $0x68] sm:$0xff] %v1245_v3 }
 0x277   : > { %v1249_v5 = vpop.f32.mrb[20].mxu1 }
 0x278   : > { %v1250_v6 = vadd.f32 %v2472_v53, %v1249_v5  ;;  %v1251_v7 = vpop.f32.mrb[21].mxu1 }
 0x279   : > { %v1252_v8 = vpop.f32.mrb[22].mxu1 }
 0x27a   : > { %1462 = vst [vmem:[%s2477_s28 + $0x70] sm:$0xff] %v1250_v6  ;;  %v1253_v9 = vadd.f32 %v2472_v53, %v1252_v8  ;;  %v1254_v10 = vpop.f32.mrb[23].mxu1 }
 0x27c   : > { %1463 = vst [vmem:[%s2477_s28 + $0x78] sm:$0xff] %v1253_v9 }
 0x27f   : > { %v1257_v11 = vpop.f32.mrb[24].mxu1 }
 0x280   : > { %v1258_v14 = vadd.f32 %v2472_v53, %v1257_v11  ;;  %v1259_v0 = vpop.f32.mrb[25].mxu1 }
 0x281   : > { %v1260_v15 = vpop.f32.mrb[26].mxu1 }
 0x282   : > { %1464 = vst [vmem:[%s2477_s28 + $0x80] sm:$0xff] %v1258_v14  ;;  %v1261_v16 = vadd.f32 %v2472_v53, %v1260_v15  ;;  %v1262_v17 = vpop.f32.mrb[27].mxu1 }
 0x284   : > { %1465 = vst [vmem:[%s2477_s28 + $0x88] sm:$0xff] %v1261_v16 }
 0x287   : > { %v1265_v18 = vpop.f32.mrb[28].mxu1 }
 0x288   : > { %v1266_v19 = vadd.f32 %v2472_v53, %v1265_v18  ;;  %v1267_v20 = vpop.f32.mrb[29].mxu1 }
 0x289   : > { %v1268_v21 = vpop.f32.mrb[30].mxu1 }
 0x28a   : > { %1466 = vst [vmem:[%s2477_s28 + $0x90] sm:$0xff] %v1266_v19  ;;  %v1269_v22 = vadd.f32 %v2472_v53, %v1268_v21  ;;  %v1270_v23 = vpop.f32.mrb[31].mxu1 }
 0x28c   : > { %1467 = vst [vmem:[%s2477_s28 + $0x98] sm:$0xff] %v1269_v22 }
 0x28f   : > { %v1273_v24 = vpop.f32.mrb[32].mxu1 }
 0x290   : > { %v1274_v25 = vadd.f32 %v2472_v53, %v1273_v24  ;;  %v1275_v26 = vpop.f32.mrb[33].mxu1 }
 0x291   : > { %v1276_v27 = vpop.f32.mrb[34].mxu1 }
 0x292   : > { %1468 = vst [vmem:[%s2477_s28 + $0xa0] sm:$0xff] %v1274_v25  ;;  %v1277_v28 = vadd.f32 %v2472_v53, %v1276_v27  ;;  %v1278_v31 = vpop.f32.mrb[35].mxu1 }
 0x294   : > { %1469 = vst [vmem:[%s2477_s28 + $0xa8] sm:$0xff] %v1277_v28 }
 0x297   : > { %v1281_v13 = vpop.f32.mrb[36].mxu1 }
 0x298   : > { %v1282_v32 = vadd.f32 %v2472_v53, %v1281_v13  ;;  %v1283_v33 = vpop.f32.mrb[37].mxu1 }
 0x299   : > { %v1284_v34 = vpop.f32.mrb[38].mxu1 }
 0x29a   : > { %1470 = vst [vmem:[%s2477_s28 + $0xb0] sm:$0xff] %v1282_v32  ;;  %v1285_v35 = vadd.f32 %v2472_v53, %v1284_v34  ;;  %v1286_v36 = vpop.f32.mrb[39].mxu1 }
 0x29c   : > { %1471 = vst [vmem:[%s2477_s28 + $0xb8] sm:$0xff] %v1285_v35 }
 0x29f   : > { %v1289_v37 = vpop.f32.mrb[40].mxu1 }
 0x2a0   : > { %v1290_v38 = vadd.f32 %v2472_v53, %v1289_v37  ;;  %v1291_v39 = vpop.f32.mrb[41].mxu1 }
 0x2a1   : > { %v1292_v40 = vpop.f32.mrb[42].mxu1 }
 0x2a2   : > { %1472 = vst [vmem:[%s2477_s28 + $0xc0] sm:$0xff] %v1290_v38  ;;  %v1293_v41 = vadd.f32 %v2472_v53, %v1292_v40  ;;  %v1294_v12 = vpop.f32.mrb[43].mxu1 }
 0x2a4   : > { %1473 = vst [vmem:[%s2477_s28 + $0xc8] sm:$0xff] %v1293_v41 }
 0x2a7   : > { %v1297_v42 = vpop.f32.mrb[44].mxu1 }
 0x2a8   : > { %v1298_v43 = vadd.f32 %v2472_v53, %v1297_v42  ;;  %v1299_v56 = vpop.f32.mrb[45].mxu1 }
 0x2a9   : > { %v1300_v57 = vpop.f32.mrb[46].mxu1 }
 0x2aa   : > { %1474 = vst [vmem:[%s2477_s28 + $0xd0] sm:$0xff] %v1298_v43  ;;  %v1301_v30 = vadd.f32 %v2472_v53, %v1300_v57  ;;  %v1302_v44 = vpop.f32.mrb[47].mxu1 }
 0x2ac   : > { %1475 = vst [vmem:[%s2477_s28 + $0xd8] sm:$0xff] %v1301_v30 }
 0x2af   : > { %v1305_v45 = vpop.f32.mrb[48].mxu1 }
 0x2b0   : > { %v1306_v46 = vadd.f32 %v2472_v53, %v1305_v45  ;;  %v1307_v47 = vpop.f32.mrb[49].mxu1 }
 0x2b1   : > { %v1308_v48 = vpop.f32.mrb[50].mxu1 }
 0x2b2   : > { %1476 = vst [vmem:[%s2477_s28 + $0xe0] sm:$0xff] %v1306_v46  ;;  %v1309_v49 = vadd.f32 %v2472_v53, %v1308_v48  ;;  %v1310_v50 = vpop.f32.mrb[51].mxu1 }
 0x2b4   : > { %1477 = vst [vmem:[%s2477_s28 + $0xe8] sm:$0xff] %v1309_v49 }
 0x2b7   : > { %v1313_v51 = vpop.f32.mrb[52].mxu1 }
 0x2b8   : > { %v1314_v52 = vadd.f32 %v2472_v53, %v1313_v51  ;;  %v1315_v54 = vpop.f32.mrb[53].mxu1 }
 0x2b9   : > { %v1316_v55 = vpop.f32.mrb[54].mxu1 }
 0x2ba   : > { %1478 = vst [vmem:[%s2477_s28 + $0xf0] sm:$0xff] %v1314_v52  ;;  %v1317_v29 = vadd.f32 %v2472_v53, %v1316_v55  ;;  %v1318_v58 = vpop.f32.mrb[55].mxu1 }
 0x2bc   : > { %1479 = vst [vmem:[%s2477_s28 + $0xf8] sm:$0xff] %v1317_v29 }
 0x2bf   : > { %v1321_v59 = vpop.f32.mrb[56].mxu1 }
 0x2c0   : > { %v1322_v60 = vadd.f32 %v2472_v53, %v1321_v59  ;;  %v1323_v61 = vpop.f32.mrb[57].mxu1 }
 0x2c1   : > { %v1324_v62 = vpop.f32.mrb[58].mxu1 }
 0x2c2   : > { %1480 = vst [vmem:[%s2477_s28 + $0x100] sm:$0xff] %v1322_v60  ;;  %v1325_v63 = vadd.f32 %v2472_v53, %v1324_v62  ;;  %v1326_v1 = vpop.f32.mrb[59].mxu1 }
 0x2c4   : > { %1481 = vst [vmem:[%s2477_s28 + $0x108] sm:$0xff] %v1325_v63 }
 0x2c7   : > { %v1329_v2 = vpop.f32.mrb[60].mxu1 }
 0x2c8   : > { %v1330_v3 = vadd.f32 %v2472_v53, %v1329_v2  ;;  %v1331_v4 = vpop.f32.mrb[61].mxu1 }
 0x2c9   : > { %v1332_v5 = vpop.f32.mrb[62].mxu1 }
 0x2ca   : > { %1482 = vst [vmem:[%s2477_s28 + $0x110] sm:$0xff] %v1330_v3  ;;  %v1333_v6 = vadd.f32 %v2472_v53, %v1332_v5  ;;  %v1334_v7 = vpop.f32.mrb[63].mxu1 }
 0x2cc   : > { %1483 = vst [vmem:[%s2477_s28 + $0x118] sm:$0xff] %v1333_v6 }
 0x2cf   : > { %v1337_v8 = vpop.f32.mrb[64].mxu1 }
 0x2d0   : > { %v1338_v9 = vadd.f32 %v2472_v53, %v1337_v8  ;;  %v1339_v10 = vpop.f32.mrb[65].mxu1 }
 0x2d1   : > { %v1340_v11 = vpop.f32.mrb[66].mxu1 }
 0x2d2   : > { %1484 = vst [vmem:[%s2477_s28 + $0x120] sm:$0xff] %v1338_v9  ;;  %v1341_v14 = vadd.f32 %v2472_v53, %v1340_v11  ;;  %v1342_v0 = vpop.f32.mrb[67].mxu1 }
 0x2d4   : > { %1485 = vst [vmem:[%s2477_s28 + $0x128] sm:$0xff] %v1341_v14 }
 0x2d7   : > { %v1345_v15 = vpop.f32.mrb[68].mxu1 }
 0x2d8   : > { %v1346_v16 = vadd.f32 %v2472_v53, %v1345_v15  ;;  %v1347_v17 = vpop.f32.mrb[69].mxu1 }
 0x2d9   : > { %v1348_v18 = vpop.f32.mrb[70].mxu1 }
 0x2da   : > { %1486 = vst [vmem:[%s2477_s28 + $0x130] sm:$0xff] %v1346_v16  ;;  %v1349_v19 = vadd.f32 %v2472_v53, %v1348_v18  ;;  %v1350_v20 = vpop.f32.mrb[71].mxu1 }
 0x2dc   : > { %1487 = vst [vmem:[%s2477_s28 + $0x138] sm:$0xff] %v1349_v19 }
 0x2df   : > { %v1353_v21 = vpop.f32.mrb[72].mxu1 }
 0x2e0   : > { %v1354_v22 = vadd.f32 %v2472_v53, %v1353_v21  ;;  %v1355_v23 = vpop.f32.mrb[73].mxu1 }
 0x2e1   : > { %v1356_v24 = vpop.f32.mrb[74].mxu1 }
 0x2e2   : > { %1488 = vst [vmem:[%s2477_s28 + $0x140] sm:$0xff] %v1354_v22  ;;  %v1357_v25 = vadd.f32 %v2472_v53, %v1356_v24  ;;  %v1358_v26 = vpop.f32.mrb[75].mxu1 }
 0x2e4   : > { %1489 = vst [vmem:[%s2477_s28 + $0x148] sm:$0xff] %v1357_v25 }
 0x2e7   : > { %v1361_v27 = vpop.f32.mrb[76].mxu1 }
 0x2e8   : > { %v1362_v28 = vadd.f32 %v2472_v53, %v1361_v27  ;;  %v1363_v31 = vpop.f32.mrb[77].mxu1 }
 0x2e9   : > { %v1364_v13 = vpop.f32.mrb[78].mxu1 }
 0x2ea   : > { %1490 = vst [vmem:[%s2477_s28 + $0x150] sm:$0xff] %v1362_v28  ;;  %v1365_v32 = vadd.f32 %v2472_v53, %v1364_v13  ;;  %v1366_v33 = vpop.f32.mrb[79].mxu1 }
 0x2ec   : > { %1491 = vst [vmem:[%s2477_s28 + $0x158] sm:$0xff] %v1365_v32 }
 0x2ef   : > { %v1369_v34 = vpop.f32.mrb[80].mxu1 }
 0x2f0   : > { %v1370_v35 = vadd.f32 %v2472_v53, %v1369_v34  ;;  %v1371_v36 = vpop.f32.mrb[81].mxu1 }
 0x2f1   : > { %v1372_v37 = vpop.f32.mrb[82].mxu1 }
 0x2f2   : > { %1492 = vst [vmem:[%s2477_s28 + $0x160] sm:$0xff] %v1370_v35  ;;  %v1373_v38 = vadd.f32 %v2472_v53, %v1372_v37  ;;  %v1374_v39 = vpop.f32.mrb[83].mxu1 }
 0x2f4   : > { %1493 = vst [vmem:[%s2477_s28 + $0x168] sm:$0xff] %v1373_v38 }
 0x2f7   : > { %v1377_v40 = vpop.f32.mrb[84].mxu1 }
 0x2f8   : > { %v1378_v41 = vadd.f32 %v2472_v53, %v1377_v40  ;;  %v1379_v12 = vpop.f32.mrb[85].mxu1 }
 0x2f9   : > { %v1380_v42 = vpop.f32.mrb[86].mxu1 }
 0x2fa   : > { %1494 = vst [vmem:[%s2477_s28 + $0x170] sm:$0xff] %v1378_v41  ;;  %v1381_v43 = vadd.f32 %v2472_v53, %v1380_v42  ;;  %v1382_v56 = vpop.f32.mrb[87].mxu1 }
 0x2fc   : > { %1495 = vst [vmem:[%s2477_s28 + $0x178] sm:$0xff] %v1381_v43 }
 0x2ff   : > { %v1385_v57 = vpop.f32.mrb[88].mxu1 }
 0x300   : > { %v1386_v30 = vadd.f32 %v2472_v53, %v1385_v57  ;;  %v1387_v44 = vpop.f32.mrb[89].mxu1 }
 0x301   : > { %v1388_v45 = vpop.f32.mrb[90].mxu1 }
 0x302   : > { %1496 = vst [vmem:[%s2477_s28 + $0x180] sm:$0xff] %v1386_v30  ;;  %v1389_v46 = vadd.f32 %v2472_v53, %v1388_v45  ;;  %v1390_v47 = vpop.f32.mrb[91].mxu1 }
 0x304   : > { %1497 = vst [vmem:[%s2477_s28 + $0x188] sm:$0xff] %v1389_v46 }
 0x307   : > { %v1393_v48 = vpop.f32.mrb[92].mxu1 }
 0x308   : > { %v1394_v49 = vadd.f32 %v2472_v53, %v1393_v48  ;;  %v1395_v50 = vpop.f32.mrb[93].mxu1 }
 0x309   : > { %v1396_v51 = vpop.f32.mrb[94].mxu1 }
 0x30a   : > { %1498 = vst [vmem:[%s2477_s28 + $0x190] sm:$0xff] %v1394_v49  ;;  %v1397_v52 = vadd.f32 %v2472_v53, %v1396_v51  ;;  %v1398_v54 = vpop.f32.mrb[95].mxu1 }
 0x30c   : > { %1499 = vst [vmem:[%s2477_s28 + $0x198] sm:$0xff] %v1397_v52 }
 0x30f   : > { %v1401_v55 = vpop.f32.mrb[96].mxu1 }
 0x310   : > { %v1402_v29 = vadd.f32 %v2472_v53, %v1401_v55  ;;  %v1403_v58 = vpop.f32.mrb[97].mxu1 }
 0x311   : > { %v1404_v59 = vpop.f32.mrb[98].mxu1 }
 0x312   : > { %1500 = vst [vmem:[%s2477_s28 + $0x1a0] sm:$0xff] %v1402_v29  ;;  %v1405_v60 = vadd.f32 %v2472_v53, %v1404_v59  ;;  %v1406_v61 = vpop.f32.mrb[99].mxu1 }
 0x314   : > { %1501 = vst [vmem:[%s2477_s28 + $0x1a8] sm:$0xff] %v1405_v60 }
 0x317   : > { %v1409_v62 = vpop.f32.mrb[100].mxu1 }
 0x318   : > { %v1410_v63 = vadd.f32 %v2472_v53, %v1409_v62  ;;  %v1411_v1 = vpop.f32.mrb[101].mxu1 }
 0x319   : > { %v1412_v2 = vpop.f32.mrb[102].mxu1 }
 0x31a   : > { %1502 = vst [vmem:[%s2477_s28 + $0x1b0] sm:$0xff] %v1410_v63  ;;  %v1413_v3 = vadd.f32 %v2472_v53, %v1412_v2  ;;  %v1414_v4 = vpop.f32.mrb[103].mxu1 }
 0x31c   : > { %1503 = vst [vmem:[%s2477_s28 + $0x1b8] sm:$0xff] %v1413_v3 }
 0x31f   : > { %v1417_v5 = vpop.f32.mrb[104].mxu1 }
 0x320   : > { %v1418_v6 = vadd.f32 %v2472_v53, %v1417_v5  ;;  %v1419_v7 = vpop.f32.mrb[105].mxu1 }
 0x321   : > { %v1420_v8 = vpop.f32.mrb[106].mxu1 }
 0x322   : > { %1504 = vst [vmem:[%s2477_s28 + $0x1c0] sm:$0xff] %v1418_v6  ;;  %v1421_v9 = vadd.f32 %v2472_v53, %v1420_v8  ;;  %v1422_v10 = vpop.f32.mrb[107].mxu1 }
 0x324   : > { %1505 = vst [vmem:[%s2477_s28 + $0x1c8] sm:$0xff] %v1421_v9 }
 0x327   : > { %v1425_v11 = vpop.f32.mrb[108].mxu1 }
 0x328   : > { %v1426_v14 = vadd.f32 %v2472_v53, %v1425_v11  ;;  %v1427_v0 = vpop.f32.mrb[109].mxu1 }
 0x329   : > { %v1428_v15 = vpop.f32.mrb[110].mxu1 }
 0x32a   : > { %1506 = vst [vmem:[%s2477_s28 + $0x1d0] sm:$0xff] %v1426_v14  ;;  %v1429_v16 = vadd.f32 %v2472_v53, %v1428_v15  ;;  %v1430_v17 = vpop.f32.mrb[111].mxu1 }
 0x32c   : > { %1507 = vst [vmem:[%s2477_s28 + $0x1d8] sm:$0xff] %v1429_v16 }
 0x32f   : > { %v1433_v18 = vpop.f32.mrb[112].mxu1 }
 0x330   : > { %v1434_v19 = vadd.f32 %v2472_v53, %v1433_v18  ;;  %v1435_v20 = vpop.f32.mrb[113].mxu1 }
 0x331   : > { %v1436_v21 = vpop.f32.mrb[114].mxu1 }
 0x332   : > { %1508 = vst [vmem:[%s2477_s28 + $0x1e0] sm:$0xff] %v1434_v19  ;;  %v1437_v22 = vadd.f32 %v2472_v53, %v1436_v21  ;;  %v1438_v23 = vpop.f32.mrb[115].mxu1 }
 0x334   : > { %1509 = vst [vmem:[%s2477_s28 + $0x1e8] sm:$0xff] %v1437_v22 }
 0x337   : > { %v1441_v24 = vpop.f32.mrb[116].mxu1 }
 0x338   : > { %v1442_v25 = vadd.f32 %v2472_v53, %v1441_v24  ;;  %v1443_v26 = vpop.f32.mrb[117].mxu1 }
 0x339   : > { %v1444_v27 = vpop.f32.mrb[118].mxu1 }
 0x33a   : > { %1510 = vst [vmem:[%s2477_s28 + $0x1f0] sm:$0xff] %v1442_v25  ;;  %v1445_v28 = vadd.f32 %v2472_v53, %v1444_v27  ;;  %v1446_v31 = vpop.f32.mrb[119].mxu1 }
 0x33c   : > { %1511 = vst [vmem:[%s2477_s28 + $0x1f8] sm:$0xff] %v1445_v28 }
 0x33d   : > { %1916 = shalt.err (!%p1913_p7)
}
 0x33e   : > { %s1917_s14 = scalar_lea.hbm %s2616_s12, 8192  ;;  %s1921_s15 = scalar_lea.hbm %s2669_s5, 32768 }
 0x33f   : > { %p1918_p9 = scmp.ne.s32.totalorder %s2616_s12, %s1917_s14  ;;  %p1922_p5 = scmp.lt.u32.totalorder %s2616_s12, %s2669_s5 }
 0x340   : > { %p1923_p10 = scmp.lt.u32.totalorder %s1921_s15, %s1917_s14  ;;  %p1925_p2 = scmp.lt.u32.totalorder %s1917_s14, %s2616_s12 }
 0x341   : > { %p1919_p12 = pnand %p1918_p9, %p2134_p8 }
 0x342   : > { %p1924_p1 = por %p1923_p10, %p1922_p5 }
 0x343   : > { %p1920_p0 = pneg %p1919_p12 }
 0x344   : > { %p1926_p4 = por %p1925_p2, %p1924_p1 }
 0x346   : > { %p1927_p6 = pnand %p1926_p4, %p1920_p0 }
 0x348   : > { %1930 = shalt.err (!%p1927_p6)
}
 0x349   : > { %s1984_s13 = smov 128   ;;  %s1985_s11 = smov 8  }
 0x34a   : > { %1713 = dma.vmem_to_hbm [thread:$0]  (%p2134_p8), %s2618_s17, 8192, %s2616_s12, %s1513_s22, %s1984_s13, %s1984_s13, %s1985_s11  }
 0x34b PF: > { %p1735_p11 = scmp.ge.s32.totalorder %s1973_s21, 2  ;;  %s1541_s29 = sand.u32 1, %s1961_s18  }
 0x34c   : > { %p2684_p13 = scmp.ne.s32.totalorder %s2674_s25, 0  ;;  %s1542_s30 = scalar_lea.sflag [#allocation4], %s1541_s29 }
 0x34e   : > { %p1727_p3 = pnand %p1735_p11, %p2684_p13 }
 0x350   : > { %1956 = dma.done.wait (!%p1727_p3), %s1542_s30, 8192  }
 0x351   : > { %1958 = vsyncadd (!%p1727_p3), %s1542_s30, 4294959104  ;;  %p19_p7 = scmp.ge.s32.totalorder %s2121_s23, 6   ;;  %s2685_s18 = smov %s1965_s19 }
 0x352   : > { %s2686_s19 = smov %s1969_s20  ;;  %s2687_s20 = smov %s2130_s7 }
 0x353   : > { %s2688_s21 = smov %s2121_s23  ;;  %21 = sbr.rel (!%p19_p7) target bundleno = 6 (0x6), region = 93 }
 0x35a   :  { %1547 = vsyncpa [#allocation3], 1 }
 0x35b   :  { %1549 = vsyncpa [#allocation3 + $0x1], 1 }
 0x35c   :  { %1550 = vsyncpa [#allocation6], 1 }
 0x35d   :  { %1551 = vsyncpa [#allocation4], 1 }
 0x35e   :  { %1553 = vsyncpa [#allocation4 + $0x1], 1 }

</bundles_post_ra>
